<compile_context>
chip_gen: v7x
topology: tpu7x:2x2x1
jax: 0.10.0
libtpu: 0.0.40
codegen_flags: <defaults>
</compile_context>

<pallas_src>
import jax
import jax.numpy as jnp
from jax.experimental import pallas as pl
from jax.experimental.pallas import tpu as pltpu


def head_kernel(x_ref, wqkv_ref, bias_ref, o_ref):
    # x_ref:    (Bb, T, C)  activations (bf16)
    # wqkv_ref: (C, 3*P)    [Wk_pad | Wq_pad*scale | Wv_pad], each segment P=128-lane aligned
    # bias_ref: (T, T)      additive causal mask (0 on/below diag, -1e30 above), f32
    # o_ref:    (Bb, T, P)  padded head output (lane-dense, last dim multiple of 128)
    Bb, T, C = x_ref.shape
    P = o_ref.shape[-1]
    compute_dtype = x_ref.dtype  # bf16 operands -> fast MXU path; accumulation is f32

    # Fused, lane-aligned QKV projection: one (Bb*T, C) @ (C, 3P) MXU matmul.
    x2d = x_ref[...].reshape(Bb * T, C)
    qkv = jnp.dot(x2d, wqkv_ref[...], preferred_element_type=jnp.float32)   # (Bb*T, 3P) f32

    # All three slices start on 128-lane boundaries (no cross-lane relayout).
    k = qkv[:, :P].astype(compute_dtype).reshape(Bb, T, P)
    q = qkv[:, P:2 * P].astype(compute_dtype).reshape(Bb, T, P)   # 1/sqrt(H) folded into Wq
    v = qkv[:, 2 * P:].astype(compute_dtype).reshape(Bb, T, P)

    # Scores: contract the (padded) head dim directly.  Padded lanes are zero in both
    # q and k, so the result is exact.  (rhs contracts on its last dim -> no explicit
    # k transpose in source; checked that Mosaic feeds k straight to the MXU.)
    s = jax.lax.dot_general(
        q, k, (((2,), (2,)), ((0,), (0,))),
        preferred_element_type=jnp.float32)                                  # (Bb, T, T) f32

    # Precomputed additive causal bias: a single VPU add per element.
    s = s + bias_ref[...][None, :, :]

    # Numerically stable softmax in f32; EUP approx reciprocal (separate VLIW slot).
    s = s - jnp.max(s, axis=-1, keepdims=True)
    p = jnp.exp(s)
    p = p * pl.reciprocal(jnp.sum(p, axis=-1, keepdims=True), approx=True)

    # TODO(synk): nn.Dropout(0.2) on the attention weights is identity in eval mode;
    # training-mode stochastic dropout (pltpu.prng_seed / prng_random_bits) is not
    # implemented here.

    out = jax.lax.dot_general(
        p.astype(compute_dtype), v, (((2,), (1,)), ((0,), (0,))),
        preferred_element_type=jnp.float32)                                  # (Bb, T, P) f32

    o_ref[...] = out.astype(o_ref.dtype)


def _choose_block_b(B, T, C, P, in_isz, out_isz, vmem_budget):
    """Largest batch block whose per-step working set fits the VMEM budget.

    Prefers an even number of grid steps (so the 'parallel' batch axis splits evenly
    across v7x's two TensorCores) when that costs at most 2x in Bb; on v5e/v6e the
    preference is harmless since per-step overhead is ~0.35 us.
    """
    def est_bytes(Bb):
        weights = 2 * C * 3 * P * in_isz        # fused weights (double-buffered by pipeline)
        bias = 2 * T * T * 4                    # additive causal bias
        x_in = 2 * Bb * T * C * in_isz          # x block (double-buffered)
        out_b = 2 * Bb * T * P * out_isz        # output block (double-buffered)
        qkv = Bb * T * 3 * P * 4                # f32 qkv temporary
        s_p = 2 * Bb * T * T * 4                # f32 scores + probs temporaries
        o_tmp = Bb * T * P * 4                  # f32 attention-out temporary
        return weights + bias + x_in + out_b + qkv + s_p + o_tmp

    divisors = [d for d in range(1, B + 1) if B % d == 0]
    fitting = [d for d in divisors if est_bytes(d) <= vmem_budget] or [1]
    best = max(fitting)
    even_steps = [d for d in fitting if (B // d) % 2 == 0]
    if even_steps and 2 * max(even_steps) >= best:
        return max(even_steps)
    return best


def head_forward(x, wk, wq, wv, *, compute_dtype=jnp.bfloat16):
    """x: (B, T, C); wk/wq/wv: (C, H). Returns (B, T, H) (eval-mode Head forward)."""
    B, T, C = x.shape
    H = wk.shape[1]
    out_dtype = x.dtype

    # Pad each projection to a lane-aligned width (multiple of 128): in-kernel q/k/v
    # slices become vreg-aligned, the attention contraction dim reaches >= 128, and
    # the output block is lane-dense.  Zero padding leaves the math exact.
    P = ((H + 127) // 128) * 128

    scale = H ** -0.5
    def pad_w(w):
        return jnp.pad(w, ((0, 0), (0, P - H)))
    # Fold the 1/sqrt(H) attention scale into the query projection (free in-kernel).
    wqkv = jnp.concatenate([pad_w(wk), pad_w(wq * scale), pad_w(wv)], axis=1)  # (C, 3P)

    # bf16 operands -> full-rate MXU on v5e/v6e/v7x; accumulation stays f32 in-kernel.
    x_c = x.astype(compute_dtype)
    wqkv_c = wqkv.astype(compute_dtype)

    # Additive causal mask, computed once (constant index_map -> DMA'd once).
    tril = jnp.tril(jnp.ones((T, T), dtype=bool))
    bias = jnp.where(tril, jnp.float32(0.0), jnp.float32(-1e30))

    # Generation-aware VMEM budget: v7x has 64 MiB per TensorCore vs 128 MiB on v5e/v6e.
    try:
        vmem_physical = int(pltpu.get_tpu_info().vmem_capacity_bytes)
    except Exception:
        vmem_physical = 64 * 1024 * 1024  # conservative fallback (v7x per-TC VMEM)
    vmem_limit = int(vmem_physical * 0.75)
    vmem_budget = int(vmem_limit * 0.85)  # headroom for compiler temporaries

    in_isz = jnp.dtype(compute_dtype).itemsize
    out_isz = jnp.dtype(out_dtype).itemsize
    Bb = _choose_block_b(B, T, C, P, in_isz, out_isz, vmem_budget)
    grid = (B // Bb,)

    cost = pl.CostEstimate(
        flops=2 * B * T * C * 3 * P + 2 * 2 * B * T * T * P,
        transcendentals=B * T * T,
        bytes_accessed=(B * T * C * in_isz           # x (read once)
                        + C * 3 * P * in_isz         # weights (constant index -> once)
                        + T * T * 4                  # causal bias (once)
                        + B * T * P * out_isz),      # padded output
    )

    # TODO(synk): for long sequences this monolithic (T, T) score block should become a
    # flash-style q-tile / kv-loop with online softmax; the f32 s+p temporaries are
    # ~2*Bb*T^2*4 bytes, so the threshold is ~T>=1-2K on v7x (64 MiB VMEM) and ~T>=2-3K
    # on v5e/v6e.  At the module's block_size=256 the full score tile is tiny.
    out_padded = pl.pallas_call(
        head_kernel,
        out_shape=jax.ShapeDtypeStruct((B, T, P), out_dtype),
        grid_spec=pltpu.PrefetchScalarGridSpec(
            num_scalar_prefetch=0,
            grid=grid,
            in_specs=[
                pl.BlockSpec((Bb, T, C), lambda b: (b, 0, 0)),
                pl.BlockSpec((C, 3 * P), lambda b: (0, 0)),
                pl.BlockSpec((T, T), lambda b: (0, 0)),
            ],
            out_specs=pl.BlockSpec((Bb, T, P), lambda b: (b, 0, 0)),
        ),
        compiler_params=pltpu.CompilerParams(
            dimension_semantics=("parallel",),
            vmem_limit_bytes=vmem_limit,
        ),
        cost_estimate=cost,
    )(x_c, wqkv_c, bias)

    # Drop the zero-padded head columns (cheap XLA slice outside the kernel).
    return out_padded[:, :, :H]


if __name__ == "__main__":
    # Scaled-down but TPU-friendly shapes consistent with Head(head_size):
    # n_embd 384 -> 128, block_size 256 -> T=64, head_size 64 (= n_embd // n_head), B=8.
    B, T = 8, 64
    n_embd = 128
    head_size = 64

    key = jax.random.PRNGKey(0)
    kx, kk, kq, kv = jax.random.split(key, 4)

    x = jax.random.normal(kx, (B, T, n_embd), dtype=jnp.float32)

    # Deterministic init mimicking nn.Linear(bias=False): U(-1/sqrt(C), 1/sqrt(C)).
    bound = 1.0 / (n_embd ** 0.5)
    wk = jax.random.uniform(kk, (n_embd, head_size), jnp.float32, -bound, bound)
    wq = jax.random.uniform(kq, (n_embd, head_size), jnp.float32, -bound, bound)
    wv = jax.random.uniform(kv, (n_embd, head_size), jnp.float32, -bound, bound)

    out = head_forward(x, wk, wq, wv)
    jax.block_until_ready(out)

    # Pure-JAX f32 reference (eval mode: dropout = identity).
    k_ = x @ wk
    q_ = x @ wq
    v_ = x @ wv
    s_ = (q_ @ jnp.swapaxes(k_, -2, -1)) * (head_size ** -0.5)
    mask = jnp.tril(jnp.ones((T, T), dtype=bool))
    s_ = jnp.where(mask, s_, -jnp.inf)
    p_ = jax.nn.softmax(s_, axis=-1)
    ref = p_ @ v_

    assert out.shape == (B, T, head_size)
    max_err = float(jnp.max(jnp.abs(out.astype(jnp.float32) - ref)))
    # Tolerance accounts for bf16 MXU operands (f32 accumulation) and the EUP approx
    # reciprocal in the softmax denominator.
    assert jnp.allclose(out.astype(jnp.float32), ref, atol=5e-2, rtol=5e-2), max_err
    print("KERNEL_OK")
</pallas_src>

<mosaic_0001>
module attributes {stable_mosaic.version = 11 : i64} {
  func.func @head_kernel(%arg0: i32, %arg1: memref<4x64x128xbf16, #tpu.memory_space<vmem>>, %arg2: memref<128x384xbf16, #tpu.memory_space<vmem>>, %arg3: memref<64x64xf32, #tpu.memory_space<vmem>>, %arg4: memref<4x64x128xf32, #tpu.memory_space<vmem>>) attributes {dimension_semantics = [#tpu.dimension_semantics<parallel>], iteration_bounds = array<i64: 2>, scalar_prefetch = 0 : i64, scratch_operands = 0 : i64, tpu.core_type = #tpu.core_type<tc>, window_params = [{transform_indices = @transform_0, window_bounds = array<i64: 4, 64, 128>}, {pipeline_mode = #tpu.pipeline_mode<synchronous>, transform_indices = @transform_1, window_bounds = array<i64: 128, 384>}, {pipeline_mode = #tpu.pipeline_mode<synchronous>, transform_indices = @transform_2, window_bounds = array<i64: 64, 64>}, {transform_indices = @transform_3, window_bounds = array<i64: 4, 64, 128>}]} {
    %c0 = arith.constant 0 : index
    %c0_0 = arith.constant 0 : index
    %c0_1 = arith.constant 0 : index
    %0 = vector.load %arg1[%c0, %c0_0, %c0_1] : memref<4x64x128xbf16, #tpu.memory_space<vmem>>, vector<4x64x128xbf16>
    %1 = vector.shape_cast %0 : vector<4x64x128xbf16> to vector<256x128xbf16>
    %c0_2 = arith.constant 0 : index
    %c0_3 = arith.constant 0 : index
    %2 = vector.load %arg2[%c0_2, %c0_3] : memref<128x384xbf16, #tpu.memory_space<vmem>>, vector<128x384xbf16>
    %cst = arith.constant dense<0.000000e+00> : vector<256x384xf32>
    %3 = tpu.matmul %1, %2, %cst {dimension_numbers = #tpu.dot_dimension_numbers<[1], [0], [0], [1], [0, 0, 1, 1], [], []>} : vector<256x128xbf16>, vector<128x384xbf16>, vector<256x384xf32> -> vector<256x384xf32>
    %4 = vector.extract_strided_slice %3 {offsets = [0, 0], sizes = [256, 128], strides = [1, 1]} : vector<256x384xf32> to vector<256x128xf32>
    %5 = arith.truncf %4 : vector<256x128xf32> to vector<256x128xbf16>
    %6 = vector.shape_cast %5 : vector<256x128xbf16> to vector<4x64x128xbf16>
    %7 = vector.extract_strided_slice %3 {offsets = [0, 128], sizes = [256, 128], strides = [1, 1]} : vector<256x384xf32> to vector<256x128xf32>
    %8 = arith.truncf %7 : vector<256x128xf32> to vector<256x128xbf16>
    %9 = vector.shape_cast %8 : vector<256x128xbf16> to vector<4x64x128xbf16>
    %10 = vector.extract_strided_slice %3 {offsets = [0, 256], sizes = [256, 128], strides = [1, 1]} : vector<256x384xf32> to vector<256x128xf32>
    %11 = arith.truncf %10 : vector<256x128xf32> to vector<256x128xbf16>
    %12 = vector.shape_cast %11 : vector<256x128xbf16> to vector<4x64x128xbf16>
    %cst_4 = arith.constant dense<0.000000e+00> : vector<4x64x64xf32>
    %13 = tpu.matmul %9, %6, %cst_4 {dimension_numbers = #tpu.dot_dimension_numbers<[2], [2], [1], [1], [0, 0, 0, 1, 1, 1], [0], [0]>} : vector<4x64x128xbf16>, vector<4x64x128xbf16>, vector<4x64x64xf32> -> vector<4x64x64xf32>
    %c0_5 = arith.constant 0 : index
    %c0_6 = arith.constant 0 : index
    %14 = vector.load %arg3[%c0_5, %c0_6] : memref<64x64xf32, #tpu.memory_space<vmem>>, vector<64x64xf32>
    %15 = vector.shape_cast %14 : vector<64x64xf32> to vector<1x64x64xf32>
    %16 = vector.broadcast %15 : vector<1x64x64xf32> to vector<4x64x64xf32>
    %17 = arith.addf %13, %16 : vector<4x64x64xf32>
    %cst_7 = arith.constant dense<0xFF800000> : vector<4x64xf32>
    %18 = vector.multi_reduction <maximumf>, %17, %cst_7 [2] : vector<4x64x64xf32> to vector<4x64xf32>
    %19 = vector.shape_cast %18 : vector<4x64xf32> to vector<4x64x1xf32>
    %20 = vector.broadcast %19 : vector<4x64x1xf32> to vector<4x64x64xf32>
    %21 = arith.subf %17, %20 : vector<4x64x64xf32>
    %22 = math.exp %21 : vector<4x64x64xf32>
    %cst_8 = arith.constant dense<0.000000e+00> : vector<4x64xf32>
    %23 = vector.multi_reduction <add>, %22, %cst_8 [2] : vector<4x64x64xf32> to vector<4x64xf32>
    %24 = vector.shape_cast %23 : vector<4x64xf32> to vector<4x64x1xf32>
    %25 = tpu.reciprocal %24 {approx = true} : vector<4x64x1xf32> -> vector<4x64x1xf32>
    %26 = vector.broadcast %25 : vector<4x64x1xf32> to vector<4x64x64xf32>
    %27 = arith.mulf %22, %26 : vector<4x64x64xf32>
    %28 = arith.truncf %27 : vector<4x64x64xf32> to vector<4x64x64xbf16>
    %cst_9 = arith.constant dense<0.000000e+00> : vector<4x64x128xf32>
    %29 = tpu.matmul %28, %12, %cst_9 {dimension_numbers = #tpu.dot_dimension_numbers<[2], [1], [1], [2], [0, 0, 0, 1, 1, 2], [0], [0]>} : vector<4x64x64xbf16>, vector<4x64x128xbf16>, vector<4x64x128xf32> -> vector<4x64x128xf32>
    %c0_10 = arith.constant 0 : index
    %c0_11 = arith.constant 0 : index
    %c0_12 = arith.constant 0 : index
    %30 = vector.load %arg4[%c0_10, %c0_11, %c0_12] : memref<4x64x128xf32, #tpu.memory_space<vmem>>, vector<4x64x128xf32>
    tpu.vector_store %arg4[%c0_10, %c0_11, %c0_12], %29 {strides = array<i32>} : memref<4x64x128xf32, #tpu.memory_space<vmem>>, vector<4x64x128xf32>,
    return
  }
  func.func @transform_0(%arg0: i32) -> (i32, i32, i32) {
    %c0_i32 = arith.constant 0 : i32
    %c0_i32_0 = arith.constant 0 : i32
    %c0_i32_1 = arith.constant 0 : i32
    return %arg0, %c0_i32, %c0_i32_0 : i32, i32, i32
  }
  func.func @transform_1(%arg0: i32) -> (i32, i32) {
    %c0_i32 = arith.constant 0 : i32
    %c0_i32_0 = arith.constant 0 : i32
    %c0_i32_1 = arith.constant 0 : i32
    return %c0_i32, %c0_i32_0 : i32, i32
  }
  func.func @transform_2(%arg0: i32) -> (i32, i32) {
    %c0_i32 = arith.constant 0 : i32
    %c0_i32_0 = arith.constant 0 : i32
    %c0_i32_1 = arith.constant 0 : i32
    return %c0_i32, %c0_i32_0 : i32, i32
  }
  func.func @transform_3(%arg0: i32) -> (i32, i32, i32) {
    %c0_i32 = arith.constant 0 : i32
    %c0_i32_0 = arith.constant 0 : i32
    %c0_i32_1 = arith.constant 0 : i32
    return %arg0, %c0_i32, %c0_i32_0 : i32, i32, i32
  }
}

</mosaic_0001>

<bundles_post_ra>
// kernel: tpu_custom_call.1
= control target key start
LH: loop header
LB: loop body
LE: loop exit
PB: predicated region body
PF: predicated region fallthrough
CT: control target
= control target key end

     0   :  { %8 = vsyncpa [#allocation3], 0  ;;  %s3535_s0 = inlined_call_operand.hbm [shape: bf16[8,64,128], index: 0, kind: input, shape index: {}]   ;;  %s3536_s1 = inlined_call_operand.hbm [shape: bf16[128,384], index: 1, kind: input, shape index: {}]   ;;  %s3537_s2 = inlined_call_operand.hbm [shape: f32[64,64], index: 2, kind: input, shape index: {}]   ;;  %s3538_s3 = inlined_call_operand.hbm [shape: f32[8,64,128], index: 3, kind: output, shape index: {}]  }
   0x1   :  { %10 = vsyncpa [#allocation3 + $0x1], 0 }
   0x2   :  { %11 = vsyncpa [#allocation6], 0 }
   0x3   :  { %12 = vsyncpa [#allocation4], 0 }
   0x4   :  { %14 = vsyncpa [#allocation4 + $0x1], 0  ;;  %s2783_s12 = smov 0   ;;  %s2785_s13 = smov 0  }
   0x5   :  { %s2787_s14 = smov 0   ;;  %s2789_s15 = smov 0  }
   0x6 LB: > { %s2804_s16 = sadd.s32 4294967295, %s2748_s15   ;;  %s1996_s17 = sadd.s32 4294967294, %s2748_s15   ;;  %s2748_s15 = sphi %s2789_s15, %s3558_s15   ;;  %s2744_s14 = sphi %s2787_s14, %s3557_s14   ;;  %s2740_s13 = sphi %s2785_s13, %s3556_s13   ;;  %s2736_s12 = sphi %s2783_s12, %s3555_s12  }
   0x7   : > { %p40_p0 = scmp.ne.s32.totalorder %s2740_s13, %s2736_s12  ;;  %p3539_p1 = scmp.eq.s32.totalorder %s2804_s16, 0 }
   0x8   : > { %p112_p3 = scmp.eq.s32.totalorder %s1996_s17, 1  ;;  %p1997_p5 = scmp.ge.s32.totalorder %s2748_s15, 1 }
   0x9   : > { %p2813_p4 = por %p3539_p1, %p40_p0  ;;  %p119_p7 = scmp.lt.s32.totalorder %s2748_s15, 3 }
   0xa   : > { %p2818_p6 = por %p112_p3, %p40_p0  ;;  %s2750_s21 = smov [#allocation5]  }
   0xb   : > { %s3542_s18 = scalar_select %p2813_p4, 1, 0 }
   0xc   : > { %s3543_s19 = scalar_select %p2818_p6, 1, 0 }
   0xd   : > { %p2823_p8 = pnand %p1997_p5, %p119_p7  ;;  %s131_s22 = sshll.u32 %s2750_s21, 4  ;;  %s2827_s22 = int_to_ptr.vmem [resolvable:$true] %s131_s22 }
   0xe   : > { %s2751_s24 = smov [#allocation7]   ;;  %s2592_s28 = scalar_lea.hbm %s3536_s1, 3072 }
   0xf   : > { %p2352_p9 = pneg %p2823_p8  ;;  %s144_s25 = sshll.u32 %s2751_s24, 4  ;;  %s2838_s25 = int_to_ptr.vmem [resolvable:$true] %s144_s25 }
  0x10   : > { %p2593_p12 = scmp.ne.s32.totalorder %s3536_s1, %s2592_s28  ;;  %p2599_p5 = scmp.lt.u32.totalorder %s2592_s28, %s3536_s1 }
  0x11   : > { %p2834_p11 = pnand %p2352_p9, %p3539_p1 }
  0x13   : > { %p2594_p13 = pneg %p2834_p11 }
  0x15   : > { %p2595_p0 = pnand %p2594_p13, %p2593_p12 }
  0x17   : > { %p2596_p3 = pneg %p2595_p0 }
  0x19   : > { %p2601_p7 = pnand %p2599_p5, %p2596_p3 }
  0x1b   : > { %2604 = shalt.err (!%p2601_p7)
}
  0x1c   : > { %s2605_s6 = scalar_lea.vmem %s2827_s22, 3072  ;;  %p2613_p2 = scmp.lt.s32.totalorder %s2827_s22, %s2827_s22 }
  0x1d   : > { %p2606_p9 = scmp.ne.s32.totalorder %s2827_s22, %s2605_s6  ;;  %p2614_p12 = scmp.lt.s32.totalorder %s2605_s6, %s2605_s6 }
  0x1f   : > { %p2608_p10 = pnand %p2606_p9, %p2594_p13  ;;  %p2615_p0 = por %p2614_p12, %p2613_p2 }
  0x21   : > { %p2609_p1 = pneg %p2608_p10 }
  0x23   : > { %p2616_p6 = pnand %p2615_p0, %p2609_p1 }
  0x25   : > { %2619 = shalt.err (!%p2616_p6)
}
  0x26   : > { %s2752_s7 = smov 192   ;;  %s2753_s8 = smov 12  }
  0x27   : > { %2355 = dma.hbm_to_vmem [thread:$0]  (!%p2834_p11), %s3536_s1, 3072, %s2827_s22, [#allocation6], %s2752_s7, %s2752_s7, %s2753_s8  }
  0x28   : > { %s2620_s21 = scalar_lea.hbm %s3537_s2, 1024 }
  0x29   : > { %p2621_p2 = scmp.ne.s32.totalorder %s3537_s2, %s2620_s21  ;;  %p2627_p10 = scmp.lt.u32.totalorder %s2620_s21, %s3537_s2 }
  0x2b   : > { %p2623_p1 = pnand %p2621_p2, %p2594_p13 }
  0x2d   : > { %p2624_p6 = pneg %p2623_p1 }
  0x2f   : > { %p2629_p3 = pnand %p2627_p10, %p2624_p6 }
  0x31   : > { %2632 = shalt.err (!%p2629_p3)
}
  0x32   : > { %s2633_s22 = scalar_lea.vmem %s2838_s25, 1024  ;;  %p2641_p12 = scmp.lt.s32.totalorder %s2838_s25, %s2838_s25 }
  0x33   : > { %p2634_p5 = scmp.ne.s32.totalorder %s2838_s25, %s2633_s22  ;;  %p2642_p0 = scmp.lt.s32.totalorder %s2633_s22, %s2633_s22 }
  0x35   : > { %p2636_p7 = pnand %p2634_p5, %p2594_p13  ;;  %p2643_p2 = por %p2642_p0, %p2641_p12 }
  0x37   : > { %p2637_p9 = pneg %p2636_p7 }
  0x39   : > { %p2644_p1 = pnand %p2643_p2, %p2637_p9 }
  0x3b   : > { %2647 = shalt.err (!%p2644_p1)
}
  0x3c   : > { %s2754_s29 = smov 128   ;;  %s2755_s30 = smov 8  }
  0x3d   : > { %2358 = dma.hbm_to_vmem [thread:$0]  (!%p2834_p11), %s3537_s2, 1024, %s2838_s25, [#allocation6], %s2754_s29, %s2754_s29, %s2755_s30  }
  0x3e   : > { %s2893_s6 = sadd.s32 1, %s2748_s15   ;;  %s27_s8 = sadd.s32 1, %s2744_s14 }
  0x3f   : > { %s24_s7 = ssub.s32 %s2748_s15, %s2893_s6  ;;  %p34_p6 = scmp.ne.s32.totalorder %s2744_s14, %s2740_s13 }
  0x40   : > { %p25_p13 = scmp.eq.s32.totalorder %s24_s7, 0  ;;  %p35_p10 = scmp.eq.s32.totalorder %s2748_s15, 0 }
  0x41   : > { %p3546_p5 = scmp.eq.s32.totalorder %s2804_s16, 1  ;;  %p2369_p9 = scmp.lt.s32.totalorder %s2748_s15, 2 }
  0x42   : > { %s2902_s9 = scalar_select %p25_p13, %s2744_s14, %s27_s8  }
  0x43   : > { %p36_p3 = por %p35_p10, %p34_p6  ;;  %p2906_p7 = por %p3546_p5, %p34_p6 }
  0x44   : > { %s158_s23 = sand.u32 1, %s2744_s14   ;;  %s2073_s25 = sshll.u32 %s2748_s15, 11 }
  0x45   : > { %s3547_s10 = scalar_select %p2906_p7, 1, 0 }
  0x46   : > { %s2001_s11 = sshll.u32 %s158_s23, 7  ;;  %s2916_s24 = scalar_lea.hbm %s3535_s0, %s2073_s25 }
  0x47   : > { %s162_s26 = scalar_lea.vmem [#allocation2], %s2001_s11  ;;  %p2920_p11 = pnand %p2369_p9, %p36_p3 }
  0x48   : > { %s170_s27 = sshll.u32 %s162_s26, 4  ;;  %s2924_s22 = scalar_lea.sflag [#allocation3], %s158_s23  ;;  %s2918_s27 = int_to_ptr.vmem [resolvable:$true] %s170_s27 }
  0x49   : > { %s2648_s29 = scalar_lea.hbm %s2916_s24, 2048  ;;  %p2650_p0 = pneg %p2920_p11 }
  0x4a   : > { %p2649_p12 = scmp.ne.s32.totalorder %s2916_s24, %s2648_s29  ;;  %s2653_s5 = scalar_lea.hbm %s3535_s0, 4096 }
  0x4b   : > { %p2654_p13 = scmp.lt.u32.totalorder %s2916_s24, %s3535_s0  ;;  %p2655_p6 = scmp.lt.u32.totalorder %s2653_s5, %s2648_s29 }
  0x4c   : > { %p2651_p2 = pnand %p2650_p0, %p2649_p12  ;;  %p2657_p3 = scmp.lt.u32.totalorder %s2648_s29, %s2916_s24 }
  0x4d   : > { %p2656_p10 = por %p2655_p6, %p2654_p13 }
  0x4e   : > { %p2652_p1 = pneg %p2651_p2 }
  0x4f   : > { %p2658_p5 = por %p2657_p3, %p2656_p10 }
  0x51   : > { %p2659_p9 = pnand %p2658_p5, %p2652_p1 }
  0x53   : > { %2662 = shalt.err (!%p2659_p9)
}
  0x54   : > { %s2663_s23 = scalar_lea.vmem %s2918_s27, 2048  ;;  %s2756_s11 = smov [#allocation2]  }
  0x55   : > { %p2664_p12 = scmp.ne.s32.totalorder %s2918_s27, %s2663_s23  ;;  %s2668_s25 = sshll.u32 %s2756_s11, 4  ;;  %s2669_s25 = int_to_ptr.vmem [resolvable:$false] %s2668_s25 }
  0x56   : > { %s2670_s17 = scalar_lea.vmem %s2669_s25, 4096  ;;  %p2671_p4 = scmp.lt.s32.totalorder %s2918_s27, %s2669_s25 }
  0x57   : > { %p2666_p2 = pnand %p2664_p12, %p2650_p0  ;;  %p2672_p13 = scmp.lt.s32.totalorder %s2670_s17, %s2663_s23 }
  0x59   : > { %p2667_p7 = pneg %p2666_p2  ;;  %p2673_p6 = por %p2672_p13, %p2671_p4 }
  0x5b   : > { %p2674_p10 = pnand %p2673_p6, %p2667_p7 }
  0x5d   : > { %2677 = shalt.err (!%p2674_p10)
}
  0x5e   : > { %s2757_s21 = smov 64   ;;  %s2758_s26 = smov 4  }
  0x5f   : > { %2362 = dma.hbm_to_vmem [thread:$0]  (!%p2920_p11), %s2916_s24, 2048, %s2918_s27, %s2924_s22, %s2757_s21, %s2757_s21, %s2758_s26  }
  0x60   : > { %182 = sbr.rel (%p2823_p8) target bundleno = 1262 (0x4ee), region = 32  ;;  %s2955_s29 = sand.u32 (!%p2823_p8), 1, %s2740_s13  }
  0x61   : > { %s2006_s30 = sshll.u32 (!%p2823_p8), %s2955_s29, 7  ;;  %s185_s4 = scalar_lea.sflag (!%p2823_p8), [#allocation3], %s2955_s29 }
  0x62   : > { %s2959_s5 = scalar_lea.vmem (!%p2823_p8), [#allocation2], %s2006_s30  ;;  %p3549_p4 = scmp.ne.s32.totalorder (!%p2823_p8), %s3542_s18, 0 }
  0x67   : > { %2723 = dma.done.wait (%p3549_p4), %s185_s4, 2048  }
  0x68   : > { %2725 = vsyncadd (%p3549_p4), %s185_s4, 4294965248  ;;  %p3550_p7 = scmp.eq.s32.totalorder %s2804_s16, 0 }
  0x6a   : > { %2727 = dma.done.wait (%p3550_p7), [#allocation6], 4096   ;;  %p3551_p8 = pmov %p3550_p7 }
  0x6b   : > { %v2759_v0 = vmov 0   ;;  %v2416_v1 = vld [vmem:[#allocation5 + $0x4] ss:$12 sps:$4 sm:$0xff]   ;;  %v2418_v2 = vld [vmem:[#allocation5] ss:$12 sps:$4 sm:$0xff]   ;;  %v2443_v28 = vld [vmem:[%s2959_s5 + $0x18] sm:$0xff]  }
  0x6c   : > { %2729 = vsyncadd (%p3551_p8), [#allocation6], 4294963200  ;;  %542 = vmatprep.mubr.bf16.mxu0 %v2759_v0  ;;  %510 = vmatprep.subr.bf16.mxu0 %v2416_v1  ;;  %v2419_v3 = vld [vmem:[#allocation5 + $0x1c] ss:$12 sps:$4 sm:$0xff]   ;;  %v2421_v4 = vld [vmem:[#allocation5 + $0x18] ss:$12 sps:$4 sm:$0xff]  }
  0x6d   : > { %511 = vmatpush1.bf16.msra.mxu0 %v2418_v2  ;;  %v2422_v5 = vld [vmem:[#allocation5 + $0x34] ss:$12 sps:$4 sm:$0xff]   ;;  %v2424_v6 = vld [vmem:[#allocation5 + $0x30] ss:$12 sps:$4 sm:$0xff]   ;;  %v2425_v7 = vld [vmem:[#allocation5 + $0x4c] ss:$12 sps:$4 sm:$0xff]  }
  0x6e   : > { %512 = vmatprep.subr.bf16.mxu0 %v2419_v3  ;;  %v2427_v8 = vld [vmem:[#allocation5 + $0x48] ss:$12 sps:$4 sm:$0xff]   ;;  %v2440_v9 = vld [vmem:[%s2959_s5] sm:$0xff]   ;;  %v2436_v15 = vld [vmem:[#allocation5 + $0x90] ss:$12 sps:$4 sm:$0xff]   ;;  %vm1180_vm0 = vcmask 523264  }
  0x6f   : > { %v2428_v10 = vld [vmem:[#allocation5 + $0x64] ss:$12 sps:$4 sm:$0xff]   ;;  %2180 = vmatprep.mubr.bf16.mxu1 %v2440_v9  ;;  %v2430_v11 = vld [vmem:[#allocation5 + $0x60] ss:$12 sps:$4 sm:$0xff]   ;;  %v2431_v12 = vld [vmem:[#allocation5 + $0x7c] ss:$12 sps:$4 sm:$0xff]  }
  0x70   : > { %v2433_v13 = vld [vmem:[#allocation5 + $0x78] ss:$12 sps:$4 sm:$0xff]   ;;  %v2434_v14 = vld [vmem:[#allocation5 + $0x94] ss:$12 sps:$4 sm:$0xff]   ;;  %v2459_v21 = vld [vmem:[#allocation5 + $0x50] ss:$12 sps:$4 sm:$0xff]  }
  0x71   : > { %513 = vmatpush1.bf16.msra.mxu0 %v2421_v4  ;;  %v2437_v16 = vld [vmem:[#allocation5 + $0xac] ss:$12 sps:$4 sm:$0xff]   ;;  %v2439_v17 = vld [vmem:[#allocation5 + $0xa8] ss:$12 sps:$4 sm:$0xff]   ;;  %v2463_v27 = vld [vmem:[#allocation5 + $0xb0] ss:$12 sps:$4 sm:$0xff]  }
  0x72   : > { %514 = vmatprep.subr.bf16.mxu0 %v2422_v5  ;;  %v2456_v18 = vld [vmem:[#allocation5 + $0x8] ss:$12 sps:$4 sm:$0xff]   ;;  %v2457_v19 = vld [vmem:[#allocation5 + $0x20] ss:$12 sps:$4 sm:$0xff]   ;;  %v2458_v20 = vld [vmem:[#allocation5 + $0x38] ss:$12 sps:$4 sm:$0xff]  }
  0x73   : > { %2164 = vmatprep.subr.bf16.mxu1 %v2456_v18  ;;  %v2441_v22 = vld [vmem:[%s2959_s5 + $0x8] sm:$0xff]   ;;  %v2442_v25 = vld [vmem:[%s2959_s5 + $0x10] sm:$0xff]   ;;  %v2462_v26 = vld [vmem:[#allocation5 + $0x98] ss:$12 sps:$4 sm:$0xff]   ;;  %s2009_s18 = sshll.u32 %s2955_s29, 8  ;;  %s2075_s24 = sshll.u32 %s2804_s16, 12 }
  0x74   : > { %2165 = vmatpush3.bf16.msra.mxu1 %v2456_v18  ;;  %v2460_v23 = vld [vmem:[#allocation5 + $0x68] ss:$12 sps:$4 sm:$0xff]   ;;  %v2461_v24 = vld [vmem:[#allocation5 + $0x80] ss:$12 sps:$4 sm:$0xff]   ;;  %v2447_v32 = vld [vmem:[%s2959_s5 + $0x38] sm:$0xff]   ;;  %s3450_s20 = scalar_lea.vmem [#allocation8], %s2009_s18  ;;  %s3486_s7 = scalar_lea.hbm %s3538_s3, %s2075_s24 }
  0x75   : > { %515 = vmatpush1.bf16.msra.mxu0 %v2424_v6  ;;  %2166 = vmatprep.subr.bf16.mxu1 %v2457_v19  ;;  %v2444_v29 = vld [vmem:[%s2959_s5 + $0x20] sm:$0xff]   ;;  %v2445_v30 = vld [vmem:[%s2959_s5 + $0x28] sm:$0xff]   ;;  %v2446_v31 = vld [vmem:[%s2959_s5 + $0x30] sm:$0xff]   ;;  %s1904_s27 = sshll.u32 %s3450_s20, 4  ;;  %s1890_s16 = scalar_lea.sflag [#allocation4], %s2955_s29  ;;  %s3488_s27 = int_to_ptr.vmem [resolvable:$true] %s1904_s27 }
  0x76   : > { %516 = vmatprep.subr.bf16.mxu0 %v2425_v7  ;;  %v2448_v33 = vld [vmem:[%s2959_s5 + $0x40] sm:$0xff]   ;;  %v2449_v34 = vld [vmem:[%s2959_s5 + $0x48] sm:$0xff]   ;;  %v2450_v35 = vld [vmem:[%s2959_s5 + $0x50] sm:$0xff]   ;;  %s2678_s8 = scalar_lea.vmem %s3488_s27, 4096  ;;  %p3552_p0 = scmp.ne.s32.totalorder %s3547_s10, 0 }
  0x77   : > { %v2451_v36 = vld [vmem:[%s2959_s5 + $0x58] sm:$0xff]   ;;  %v2452_v37 = vld [vmem:[%s2959_s5 + $0x60] sm:$0xff]   ;;  %v2453_v38 = vld [vmem:[%s2959_s5 + $0x68] sm:$0xff]   ;;  %p2679_p11 = scmp.ne.s32.totalorder %s3488_s27, %s2678_s8  ;;  %s2760_s23 = smov [#allocation8]  }
  0x78   : > { %2167 = vmatpush3.bf16.msra.mxu1 %v2457_v19  ;;  %v2454_v39 = vld [vmem:[%s2959_s5 + $0x70] sm:$0xff]   ;;  %v2455_v40 = vld [vmem:[%s2959_s5 + $0x78] sm:$0xff]   ;;  %s2682_s11 = sshll.u32 %s2760_s23, 4  ;;  %s2683_s11 = int_to_ptr.vmem [resolvable:$false] %s2682_s11 }
  0x79   : > { %517 = vmatpush1.bf16.msra.mxu0 %v2427_v8  ;;  %2168 = vmatprep.subr.bf16.mxu1 %v2458_v20  ;;  %p2680_p1 = pnand %p2679_p11, %p3552_p0  ;;  %s2684_s25 = scalar_lea.vmem %s2683_s11, 8192 }
  0x7a   : > { %518 = vmatprep.subr.bf16.mxu0 %v2428_v10  ;;  %p2685_p5 = scmp.lt.s32.totalorder %s3488_s27, %s2683_s11  ;;  %p2686_p9 = scmp.lt.s32.totalorder %s2684_s25, %s2678_s8 }
  0x7b   : > { %p2681_p3 = pneg %p2680_p1 }
  0x7c   : > { %2169 = vmatpush3.bf16.msra.mxu1 %v2458_v20  ;;  %p2687_p12 = por %p2686_p9, %p2685_p5 }
  0x7d   : > { %519 = vmatpush1.bf16.msra.mxu0 %v2430_v11  ;;  %2170 = vmatprep.subr.bf16.mxu1 %v2459_v21 }
  0x7e   : > { %520 = vmatprep.subr.bf16.mxu0 %v2431_v12  ;;  %p2688_p2 = pnand %p2687_p12, %p2681_p3 }
  0x80   : > { %2171 = vmatpush3.bf16.msra.mxu1 %v2459_v21 }
  0x81   : > { %521 = vmatpush1.bf16.msra.mxu0 %v2433_v13  ;;  %2172 = vmatprep.subr.bf16.mxu1 %v2460_v23 }
  0x82   : > { %522 = vmatprep.subr.bf16.mxu0 %v2434_v14 }
  0x84   : > { %2173 = vmatpush3.bf16.msra.mxu1 %v2460_v23 }
  0x85   : > { %523 = vmatpush1.bf16.msra.mxu0 %v2436_v15  ;;  %2174 = vmatprep.subr.bf16.mxu1 %v2461_v24 }
  0x86   : > { %524 = vmatprep.subr.bf16.mxu0 %v2437_v16 }
  0x88   : > { %2175 = vmatpush3.bf16.msra.mxu1 %v2461_v24 }
  0x89   : > { %525 = vmatpush1.bf16.msra.mxu0 %v2439_v17  ;;  %2176 = vmatprep.subr.bf16.mxu1 %v2462_v26 }
  0x8c   : > { %543 = vmatmul.mubr.bf16.vlgmr.msra.gmra.mrb[0].mxu0 %v2440_v9  ;;  %2177 = vmatpush3.bf16.msra.mxu1 %v2462_v26 }
  0x8d   : > { %552 = vmatprep.mubr.bf16.mxu0 %v2759_v0  ;;  %2178 = vmatprep.subr.bf16.mxu1 %v2463_v27 }
  0x90   : > { %2179 = vmatpush3.bf16.msra.mxu1 %v2463_v27 }
  0x93   : > { %2181 = vmatmul.mubr.bf16.vlgmr.msra.gmra.mrb[0].mxu1 %v2441_v22 }
  0x94   : > { %553 = vmatmul.mubr.bf16.gmra.mrb[4].mxu0 %v2441_v22  ;;  %2184 = vmatprep.mubr.bf16.mxu1 %v2442_v25 }
  0x95   : > { %562 = vmatprep.mubr.bf16.mxu0 %v2759_v0 }
  0x9b   : > { %2185 = vmatmul.mubr.bf16.gmra.mrb[4].mxu1 %v2443_v28 }
  0x9c   : > { %563 = vmatmul.mubr.bf16.gmra.mrb[8].mxu0 %v2442_v25  ;;  %2188 = vmatprep.mubr.bf16.mxu1 %v2444_v29 }
  0x9d   : > { %572 = vmatprep.mubr.bf16.mxu0 %v2759_v0 }
  0xa3   : > { %2189 = vmatmul.mubr.bf16.gmra.mrb[8].mxu1 %v2445_v30 }
  0xa4   : > { %573 = vmatmul.mubr.bf16.gmra.mrb[12].mxu0 %v2443_v28  ;;  %2192 = vmatprep.mubr.bf16.mxu1 %v2446_v31 }
  0xa5   : > { %582 = vmatprep.mubr.bf16.mxu0 %v2759_v0 }
  0xab   : > { %2193 = vmatmul.mubr.bf16.gmra.mrb[12].mxu1 %v2447_v32 }
  0xac   : > { %583 = vmatmul.mubr.bf16.gmra.mrb[16].mxu0 %v2444_v29  ;;  %2196 = vmatprep.mubr.bf16.mxu1 %v2448_v33 }
  0xad   : > { %592 = vmatprep.mubr.bf16.mxu0 %v2759_v0 }
  0xb3   : > { %2197 = vmatmul.mubr.bf16.gmra.mrb[16].mxu1 %v2449_v34 }
  0xb4   : > { %593 = vmatmul.mubr.bf16.gmra.mrb[20].mxu0 %v2445_v30  ;;  %2200 = vmatprep.mubr.bf16.mxu1 %v2450_v35 }
  0xb5   : > { %602 = vmatprep.mubr.bf16.mxu0 %v2759_v0 }
  0xbb   : > { %2201 = vmatmul.mubr.bf16.gmra.mrb[20].mxu1 %v2451_v36 }
  0xbc   : > { %603 = vmatmul.mubr.bf16.gmra.mrb[24].mxu0 %v2446_v31  ;;  %2204 = vmatprep.mubr.bf16.mxu1 %v2452_v37 }
  0xbd   : > { %612 = vmatprep.mubr.bf16.mxu0 %v2759_v0 }
  0xc3   : > { %2205 = vmatmul.mubr.bf16.gmra.mrb[24].mxu1 %v2453_v38 }
  0xc4   : > { %613 = vmatmul.mubr.bf16.gmra.mrb[28].mxu0 %v2447_v32  ;;  %2208 = vmatprep.mubr.bf16.mxu1 %v2454_v39 }
  0xc5   : > { %622 = vmatprep.mubr.bf16.mxu0 %v2759_v0 }
  0xcb   : > { %2209 = vmatmul.mubr.bf16.gmra.mrb[28].mxu1 %v2455_v40 }
  0xcc   : > { %623 = vmatmul.mubr.bf16.gmra.mrb[32].mxu0 %v2448_v33 }
  0xcd   : > { %632 = vmatprep.mubr.bf16.mxu0 %v2759_v0 }
  0xd4   : > { %633 = vmatmul.mubr.bf16.gmra.mrb[36].mxu0 %v2449_v34 }
  0xd5   : > { %642 = vmatprep.mubr.bf16.mxu0 %v2759_v0 }
  0xdc   : > { %643 = vmatmul.mubr.bf16.gmra.mrb[40].mxu0 %v2450_v35 }
  0xdd   : > { %652 = vmatprep.mubr.bf16.mxu0 %v2759_v0 }
  0xe4   : > { %653 = vmatmul.mubr.bf16.gmra.mrb[44].mxu0 %v2451_v36 }
  0xe5   : > { %662 = vmatprep.mubr.bf16.mxu0 %v2759_v0 }
  0xec   : > { %663 = vmatmul.mubr.bf16.gmra.mrb[48].mxu0 %v2452_v37 }
  0xed   : > { %672 = vmatprep.mubr.bf16.mxu0 %v2759_v0 }
  0xf4   : > { %673 = vmatmul.mubr.bf16.gmra.mrb[52].mxu0 %v2453_v38 }
  0xf5   : > { %682 = vmatprep.mubr.bf16.mxu0 %v2759_v0 }
  0xfc   : > { %683 = vmatmul.mubr.bf16.gmra.mrb[56].mxu0 %v2454_v39 }
  0xfd   : > { %692 = vmatprep.mubr.bf16.mxu0 %v2759_v0 }
 0x104   : > { %693 = vmatmul.mubr.bf16.gmra.mrb[60].mxu0 %v2455_v40 }
 0x15f   : > { %v544_v41 = vpop.f32.mrb[0].mxu0 }
 0x160   : > { %v546_v42 = vpop.f32.mrb[1].mxu0 }
 0x161   : > { %v548_v43 = vpop.f32.mrb[2].mxu0 }
 0x162   : > { %v864_v44 = vpack.c.bf16 %v548_v43, %v544_v41  ;;  %v550_v45 = vpop.f32.mrb[3].mxu0 }
 0x163   : > { %v880_v46 = vpack.c.bf16 %v550_v45, %v546_v42 }
 0x164   : > { %2212 = vmatprep.subr.bf16.mxu1 %v864_v44 }
 0x165   : > { %2213 = vmatpush3.bf16.xpose.msra.mxu1 %v864_v44  ;;  %2220 = vmatprep.mubr.bf16.mxu1 %v880_v46 }
 0x166   : > { %v2182_v0 = vpop.f32.mrb[0].mxu1 }
 0x167   : > { %v554_v47 = vpop.f32.mrb[4].mxu0  ;;  %v737_v2 = vpop.f32.mrb[1].mxu1 }
 0x168   : > { %v556_v48 = vpop.f32.mrb[5].mxu0  ;;  %v2183_v3 = vpop.f32.mrb[2].mxu1 }
 0x169   : > { %v558_v49 = vpop.f32.mrb[6].mxu0  ;;  %v3001_v4 = vpack.c.bf16 %v2183_v3, %v2182_v0  ;;  %v740_v5 = vpop.f32.mrb[3].mxu1 }
 0x16a   : > { %v865_v50 = vpack.c.bf16 %v558_v49, %v554_v47  ;;  %v560_v51 = vpop.f32.mrb[7].mxu0  ;;  %v3003_v6 = vpack.c.bf16 %v740_v5, %v737_v2 }
 0x16b   : > { %v881_v52 = vpack.c.bf16 %v560_v51, %v556_v48 }
 0x16c   : > { %2214 = vmatprep.subr.bf16.mxu1 %v865_v50 }
 0x16d   : > { %2215 = vmatpush3.bf16.xpose.msra.mxu1 %v865_v50 }
 0x16e   : > { %v2186_v12 = vpop.f32.mrb[4].mxu1 }
 0x16f   : > { %v564_v53 = vpop.f32.mrb[8].mxu0  ;;  %v753_v14 = vpop.f32.mrb[5].mxu1 }
 0x170   : > { %v566_v54 = vpop.f32.mrb[9].mxu0  ;;  %v2187_v15 = vpop.f32.mrb[6].mxu1 }
 0x171   : > { %v568_v55 = vpop.f32.mrb[10].mxu0  ;;  %v3005_v16 = vpack.c.bf16 %v2187_v15, %v2186_v12  ;;  %v756_v17 = vpop.f32.mrb[7].mxu1 }
 0x172   : > { %v866_v56 = vpack.c.bf16 %v568_v55, %v564_v53  ;;  %v570_v57 = vpop.f32.mrb[11].mxu0  ;;  %v3007_v18 = vpack.c.bf16 %v756_v17, %v753_v14 }
 0x173   : > { %v882_v58 = vpack.c.bf16 %v570_v57, %v566_v54 }
 0x174   : > { %2216 = vmatprep.subr.bf16.mxu1 %v866_v56 }
 0x175   : > { %2217 = vmatpush3.bf16.xpose.msra.mxu1 %v866_v56 }
 0x176   : > { %v2190_v24 = vpop.f32.mrb[8].mxu1 }
 0x177   : > { %v574_v59 = vpop.f32.mrb[12].mxu0  ;;  %v769_v26 = vpop.f32.mrb[9].mxu1 }
 0x178   : > { %v576_v60 = vpop.f32.mrb[13].mxu0  ;;  %v2191_v27 = vpop.f32.mrb[10].mxu1 }
 0x179   : > { %v578_v61 = vpop.f32.mrb[14].mxu0  ;;  %v3009_v28 = vpack.c.bf16 %v2191_v27, %v2190_v24  ;;  %v772_v29 = vpop.f32.mrb[11].mxu1 }
 0x17a   : > { %v867_v62 = vpack.c.bf16 %v578_v61, %v574_v59  ;;  %v580_v63 = vpop.f32.mrb[15].mxu0  ;;  %v3011_v30 = vpack.c.bf16 %v772_v29, %v769_v26 }
 0x17b   : > { %v883_v1 = vpack.c.bf16 %v580_v63, %v576_v60 }
 0x17c   : > { %2218 = vmatprep.subr.bf16.mxu1 %v867_v62 }
 0x17d   : > { %2219 = vmatpush3.bf16.xpose.msra.mxu1 %v867_v62 }
 0x17e   : > { %v2194_v36 = vpop.f32.mrb[12].mxu1 }
 0x17f   : > { %v584_v7 = vpop.f32.mrb[16].mxu0  ;;  %v785_v38 = vpop.f32.mrb[13].mxu1 }
 0x180   : > { %v586_v8 = vpop.f32.mrb[17].mxu0  ;;  %v2195_v39 = vpop.f32.mrb[14].mxu1 }
 0x181   : > { %v588_v9 = vpop.f32.mrb[18].mxu0  ;;  %v3013_v40 = vpack.c.bf16 %v2195_v39, %v2194_v36  ;;  %v788_v41 = vpop.f32.mrb[15].mxu1 }
 0x182   : > { %v868_v10 = vpack.c.bf16 %v588_v9, %v584_v7  ;;  %v590_v11 = vpop.f32.mrb[19].mxu0  ;;  %v3015_v42 = vpack.c.bf16 %v788_v41, %v785_v38 }
 0x183   : > { %v884_v13 = vpack.c.bf16 %v590_v11, %v586_v8 }
 0x184   : > { %2221 = vmatmul.mubr.bf16.vlgmr.msra.gmra.mrb[32].mxu1 %v881_v52  ;;  %2228 = vmatprep.subr.bf16.mxu1 %v868_v10 }
 0x185   : > { %2224 = vmatprep.mubr.bf16.mxu1 %v882_v58  ;;  %2229 = vmatpush3.bf16.xpose.msra.mxu1 %v868_v10 }
 0x186   : > { %v2198_v48 = vpop.f32.mrb[16].mxu1 }
 0x187   : > { %v594_v19 = vpop.f32.mrb[20].mxu0  ;;  %v801_v50 = vpop.f32.mrb[17].mxu1 }
 0x188   : > { %v596_v20 = vpop.f32.mrb[21].mxu0  ;;  %v2199_v51 = vpop.f32.mrb[18].mxu1 }
 0x189   : > { %v598_v21 = vpop.f32.mrb[22].mxu0  ;;  %v3017_v52 = vpack.c.bf16 %v2199_v51, %v2198_v48  ;;  %v804_v53 = vpop.f32.mrb[19].mxu1 }
 0x18a   : > { %v869_v22 = vpack.c.bf16 %v598_v21, %v594_v19  ;;  %v600_v23 = vpop.f32.mrb[23].mxu0  ;;  %v3019_v54 = vpack.c.bf16 %v804_v53, %v801_v50 }
 0x18b   : > { %v885_v25 = vpack.c.bf16 %v600_v23, %v596_v20 }
 0x18c   : > { %2225 = vmatmul.mubr.bf16.gmra.mrb[36].mxu1 %v883_v1  ;;  %2230 = vmatprep.subr.bf16.mxu1 %v869_v22 }
 0x18d   : > { %2231 = vmatpush3.bf16.xpose.msra.mxu1 %v869_v22  ;;  %2236 = vmatprep.mubr.bf16.mxu1 %v884_v13 }
 0x18e   : > { %v2202_v60 = vpop.f32.mrb[20].mxu1 }
 0x18f   : > { %v604_v31 = vpop.f32.mrb[24].mxu0  ;;  %v817_v62 = vpop.f32.mrb[21].mxu1 }
 0x190   : > { %v606_v32 = vpop.f32.mrb[25].mxu0  ;;  %v2203_v63 = vpop.f32.mrb[22].mxu1 }
 0x191   : > { %v608_v33 = vpop.f32.mrb[26].mxu0  ;;  %v3021_v0 = vpack.c.bf16 %v2203_v63, %v2202_v60  ;;  %v820_v1 = vpop.f32.mrb[23].mxu1 }
 0x192   : > { %v870_v34 = vpack.c.bf16 %v608_v33, %v604_v31  ;;  %v610_v35 = vpop.f32.mrb[27].mxu0  ;;  %v3023_v2 = vpack.c.bf16 %v820_v1, %v817_v62 }
 0x193   : > { %v886_v37 = vpack.c.bf16 %v610_v35, %v606_v32 }
 0x194   : > { %2232 = vmatprep.subr.bf16.mxu1 %v870_v34 }
 0x195   : > { %2233 = vmatpush3.bf16.xpose.msra.mxu1 %v870_v34 }
 0x196   : > { %v2206_v10 = vpop.f32.mrb[24].mxu1 }
 0x197   : > { %v614_v43 = vpop.f32.mrb[28].mxu0  ;;  %v833_v12 = vpop.f32.mrb[25].mxu1 }
 0x198   : > { %v616_v44 = vpop.f32.mrb[29].mxu0  ;;  %v2207_v13 = vpop.f32.mrb[26].mxu1 }
 0x199   : > { %v618_v45 = vpop.f32.mrb[30].mxu0  ;;  %v3025_v14 = vpack.c.bf16 %v2207_v13, %v2206_v10  ;;  %v836_v15 = vpop.f32.mrb[27].mxu1  ;;  %v3068_v10 = vld [vmem:[#allocation7 + $0x8] sm:$0xff] }
 0x19a   : > { %v871_v46 = vpack.c.bf16 %v618_v45, %v614_v43  ;;  %v620_v47 = vpop.f32.mrb[31].mxu0  ;;  %v3027_v17 = vpack.c.bf16 %v836_v15, %v833_v12  ;;  %v3077_v15 = vld [vmem:[#allocation7 + $0x30] sm:$0xff] }
 0x19b   : > { %v887_v49 = vpack.c.bf16 %v620_v47, %v616_v44 }
 0x19c   : > { %2234 = vmatprep.subr.bf16.mxu1 %v871_v46 }
 0x19d   : > { %2235 = vmatpush3.bf16.xpose.msra.mxu1 %v871_v46 }
 0x19e   : > { %v2210_v24 = vpop.f32.mrb[28].mxu1 }
 0x19f   : > { %v624_v55 = vpop.f32.mrb[32].mxu0  ;;  %v849_v26 = vpop.f32.mrb[29].mxu1 }
 0x1a0   : > { %v626_v56 = vpop.f32.mrb[33].mxu0  ;;  %v2211_v27 = vpop.f32.mrb[30].mxu1 }
 0x1a1   : > { %v628_v57 = vpop.f32.mrb[34].mxu0  ;;  %v3029_v29 = vpack.c.bf16 %v2211_v27, %v2210_v24  ;;  %v852_v31 = vpop.f32.mrb[31].mxu1 }
 0x1a2   : > { %v872_v58 = vpack.c.bf16 %v628_v57, %v624_v55  ;;  %v630_v59 = vpop.f32.mrb[35].mxu0  ;;  %v3031_v32 = vpack.c.bf16 %v852_v31, %v849_v26  ;;  %v3091_v31 = vld [vmem:[#allocation7 + $0x20] sm:$0xff] }
 0x1a3   : > { %v888_v61 = vpack.c.bf16 %v630_v59, %v626_v56 }
 0x1a4   : > { %2237 = vmatmul.mubr.bf16.vlgmr.msra.gmra.mrb[40].mxu1 %v885_v25  ;;  %2244 = vmatprep.subr.bf16.mxu0 %v872_v58 }
 0x1a5   : > { %2240 = vmatprep.mubr.bf16.mxu1 %v886_v37  ;;  %2245 = vmatpush3.bf16.xpose.msra.mxu0 %v872_v58 }
 0x1a6   : > { %2252 = vmatprep.mubr.bf16.mxu0 %v888_v61 }
 0x1a7   : > { %v634_v3 = vpop.f32.mrb[36].mxu0 }
 0x1a8   : > { %v636_v5 = vpop.f32.mrb[37].mxu0 }
 0x1a9   : > { %v638_v7 = vpop.f32.mrb[38].mxu0 }
 0x1aa   : > { %v873_v8 = vpack.c.bf16 %v638_v7, %v634_v3  ;;  %v640_v9 = vpop.f32.mrb[39].mxu0  ;;  %v3053_v3 = vld [vmem:[#allocation7] sm:$0xff] }
 0x1ab   : > { %v889_v11 = vpack.c.bf16 %v640_v9, %v636_v5 }
 0x1ac   : > { %2241 = vmatmul.mubr.bf16.gmra.mrb[44].mxu1 %v887_v49  ;;  %2246 = vmatprep.subr.bf16.mxu0 %v873_v8 }
 0x1ad   : > { %2247 = vmatpush3.bf16.xpose.msra.mxu0 %v873_v8 }
 0x1af   : > { %v644_v19 = vpop.f32.mrb[40].mxu0 }
 0x1b0   : > { %v646_v20 = vpop.f32.mrb[41].mxu0 }
 0x1b1   : > { %v648_v21 = vpop.f32.mrb[42].mxu0 }
 0x1b2   : > { %v874_v22 = vpack.c.bf16 %v648_v21, %v644_v19  ;;  %v650_v23 = vpop.f32.mrb[43].mxu0 }
 0x1b3   : > { %v890_v25 = vpack.c.bf16 %v650_v23, %v646_v20  ;;  %v3079_v20 = vld [vmem:[#allocation7 + $0x38] sm:$0xff]  ;;  %v3081_v23 = vld [vmem:[#allocation7 + $0x28] sm:$0xff] }
 0x1b4   : > { %2248 = vmatprep.subr.bf16.mxu0 %v874_v22 }
 0x1b5   : > { %2249 = vmatpush3.bf16.xpose.msra.mxu0 %v874_v22 }
 0x1b7   : > { %v654_v33 = vpop.f32.mrb[44].mxu0 }
 0x1b8   : > { %v656_v34 = vpop.f32.mrb[45].mxu0 }
 0x1b9   : > { %v658_v35 = vpop.f32.mrb[46].mxu0 }
 0x1ba   : > { %v875_v36 = vpack.c.bf16 %v658_v35, %v654_v33  ;;  %v660_v37 = vpop.f32.mrb[47].mxu0 }
 0x1bb   : > { %v891_v38 = vpack.c.bf16 %v660_v37, %v656_v34 }
 0x1bc   : > { %2250 = vmatprep.subr.bf16.mxu0 %v875_v36 }
 0x1bd   : > { %2251 = vmatpush3.bf16.xpose.msra.mxu0 %v875_v36 }
 0x1be   : > { %2276 = vmatprep.subr.bf16.mxu0 %v3003_v6 }
 0x1bf   : > { %v664_v39 = vpop.f32.mrb[48].mxu0 }
 0x1c0   : > { %v666_v41 = vpop.f32.mrb[49].mxu0 }
 0x1c1   : > { %v668_v43 = vpop.f32.mrb[50].mxu0 }
 0x1c2   : > { %v876_v44 = vpack.c.bf16 %v668_v43, %v664_v39  ;;  %v670_v45 = vpop.f32.mrb[51].mxu0 }
 0x1c3   : > { %v892_v46 = vpack.c.bf16 %v670_v45, %v666_v41 }
 0x1c4   : > { %2253 = vmatmul.mubr.bf16.vlgmr.msra.gmra.mrb[64].mxu0 %v889_v11  ;;  %2260 = vmatprep.subr.bf16.mxu1 %v876_v44 }
 0x1c5   : > { %2261 = vmatpush3.bf16.xpose.msra.mxu1 %v876_v44  ;;  %2256 = vmatprep.mubr.bf16.mxu0 %v890_v25 }
 0x1c6   : > { %2268 = vmatprep.mubr.bf16.mxu1 %v892_v46  ;;  %2277 = vmatpush3.bf16.msra.mxu0 %v3003_v6 }
 0x1c7   : > { %v674_v47 = vpop.f32.mrb[52].mxu0  ;;  %2278 = vmatprep.subr.bf16.mxu0 %v3001_v4 }
 0x1c8   : > { %v676_v48 = vpop.f32.mrb[53].mxu0 }
 0x1c9   : > { %v678_v49 = vpop.f32.mrb[54].mxu0 }
 0x1ca   : > { %v877_v50 = vpack.c.bf16 %v678_v49, %v674_v47  ;;  %v680_v51 = vpop.f32.mrb[55].mxu0  ;;  %2279 = vmatpush3.bf16.msra.mxu0 %v3001_v4 }
 0x1cb   : > { %v893_v53 = vpack.c.bf16 %v680_v51, %v676_v48  ;;  %2280 = vmatprep.subr.bf16.mxu0 %v3007_v18 }
 0x1cc   : > { %2257 = vmatmul.mubr.bf16.gmra.mrb[68].mxu0 %v891_v38  ;;  %2262 = vmatprep.subr.bf16.mxu1 %v877_v50 }
 0x1cd   : > { %2263 = vmatpush3.bf16.xpose.msra.mxu1 %v877_v50 }
 0x1ce   : > { %2281 = vmatpush3.bf16.msra.mxu0 %v3007_v18 }
 0x1cf   : > { %v684_v55 = vpop.f32.mrb[56].mxu0  ;;  %2282 = vmatprep.subr.bf16.mxu0 %v3005_v16 }
 0x1d0   : > { %v686_v6 = vpop.f32.mrb[57].mxu0 }
 0x1d1   : > { %v688_v56 = vpop.f32.mrb[58].mxu0 }
 0x1d2   : > { %v878_v57 = vpack.c.bf16 %v688_v56, %v684_v55  ;;  %v690_v58 = vpop.f32.mrb[59].mxu0  ;;  %2283 = vmatpush3.bf16.msra.mxu0 %v3005_v16  ;;  %v3051_v16 = vld [vmem:[#allocation7 + $0x10] sm:$0xff] }
 0x1d3   : > { %v894_v59 = vpack.c.bf16 %v690_v58, %v686_v6  ;;  %2308 = vmatprep.subr.bf16.mxu0 %v3019_v54 }
 0x1d4   : > { %2264 = vmatprep.subr.bf16.mxu1 %v878_v57 }
 0x1d5   : > { %2265 = vmatpush3.bf16.xpose.msra.mxu1 %v878_v57 }
 0x1d7   : > { %v694_v4 = vpop.f32.mrb[60].mxu0 }
 0x1d8   : > { %v696_v60 = vpop.f32.mrb[61].mxu0 }
 0x1d9   : > { %v698_v61 = vpop.f32.mrb[62].mxu0 }
 0x1da   : > { %v879_v62 = vpack.c.bf16 %v698_v61, %v694_v4  ;;  %v700_v63 = vpop.f32.mrb[63].mxu0 }
 0x1db   : > { %v895_v18 = vpack.c.bf16 %v700_v63, %v696_v60 }
 0x1dc   : > { %2266 = vmatprep.subr.bf16.mxu1 %v879_v62 }
 0x1dd   : > { %2267 = vmatpush3.bf16.xpose.msra.mxu1 %v879_v62 }
 0x1de   : > { %2292 = vmatprep.subr.bf16.mxu1 %v3011_v30 }
 0x1e4   : > { %2269 = vmatmul.mubr.bf16.vlgmr.msra.gmra.mrb[48].mxu1 %v893_v53 }
 0x1e5   : > { %2272 = vmatprep.mubr.bf16.mxu1 %v894_v59  ;;  %2293 = vmatpush3.bf16.msra.mxu1 %v3011_v30  ;;  %v3055_v30 = vld [vmem:[#allocation7 + $0x18] sm:$0xff] }
 0x1e6   : > { %2294 = vmatprep.subr.bf16.mxu1 %v3009_v28 }
 0x1e9   : > { %2295 = vmatpush3.bf16.msra.mxu1 %v3009_v28 }
 0x1ea   : > { %2296 = vmatprep.subr.bf16.mxu1 %v3015_v42 }
 0x1ec   : > { %2273 = vmatmul.mubr.bf16.gmra.mrb[52].mxu1 %v895_v18 }
 0x1ed   : > { %2297 = vmatpush3.bf16.msra.mxu1 %v3015_v42 }
 0x1ee   : > { %2298 = vmatprep.subr.bf16.mxu1 %v3013_v40 }
 0x1f1   : > { %2299 = vmatpush3.bf16.msra.mxu1 %v3013_v40 }
 0x1f2   : > { %2324 = vmatprep.subr.bf16.mxu1 %v3027_v17 }
 0x257   : > { %v2222_v1 = vpop.f32.mrb[32].mxu1 }
 0x258   : > { %v3058_v28 = vadd.f32 %v2222_v1, %v3051_v16  ;;  %v954_v5 = vpop.f32.mrb[33].mxu1 }
 0x259   : > { %v2223_v7 = vpop.f32.mrb[34].mxu1  ;;  %v3061_v42 = vadd.f32 %v954_v5, %v3053_v3 }
 0x25a   : > { %v3064_v40 = vadd.f32 %v2223_v7, %v3055_v30  ;;  %v957_v8 = vpop.f32.mrb[35].mxu1  ;;  %v1187_v9 = vsel %vm1180_vm0, %v3058_v28, -inf }
 0x25b   : > { %1188 = vmax.xlane.f32.xlu0 %v1187_v9  ;;  %v3073_v12 = vadd.f32 %v957_v8, %v3068_v10  ;;  %v1181_v13 = vsel %vm1180_vm0, %v3061_v42, -inf }
 0x25c   : > { %v1190_v11 = vsel %vm1180_vm0, %v3064_v40, -inf }
 0x25d   : > { %1191 = vmax.xlane.f32.xlu1 %v1190_v11  ;;  %v1184_v27 = vsel %vm1180_vm0, %v3073_v12, -inf }
 0x25f   : > { %1182 = vmax.xlane.f32.xlu0 %v1181_v13  ;;  %v2226_v19 = vpop.f32.mrb[36].mxu1 }
 0x260   : > { %v970_v21 = vpop.f32.mrb[37].mxu1  ;;  %v3084_v24 = vadd.f32 %v2226_v19, %v3077_v15 }
 0x261   : > { %v2227_v22 = vpop.f32.mrb[38].mxu1  ;;  %v3099_v35 = vadd.f32 %v970_v21, %v3091_v31 }
 0x262   : > { %v3087_v25 = vadd.f32 %v2227_v22, %v3079_v20  ;;  %v973_v26 = vpop.f32.mrb[39].mxu1  ;;  %v1199_v36 = vsel %vm1180_vm0, %v3084_v24, -inf }
 0x263   : > { %1185 = vmax.xlane.f32.xlu0 %v1184_v27  ;;  %v3094_v33 = vadd.f32 %v973_v26, %v3081_v23  ;;  %v1193_v38 = vsel %vm1180_vm0, %v3099_v35, -inf }
 0x264   : > { %v1202_v34 = vsel %vm1180_vm0, %v3087_v25, -inf }
 0x265   : > { %1203 = vmax.xlane.f32.xlu1 %v1202_v34  ;;  %v1196_v37 = vsel %vm1180_vm0, %v3094_v33, -inf }
 0x267   : > { %1200 = vmax.xlane.f32.xlu0 %v1199_v36 }
 0x269   : > { %1197 = vmax.xlane.f32.xlu1 %v1196_v37 }
 0x26b   : > { %1194 = vmax.xlane.f32.xlu0 %v1193_v38 }
 0x277   : > { %v2238_v39 = vpop.f32.mrb[40].mxu1 }
 0x278   : > { %v3108_v41 = vadd.f32 %v2238_v39, %v3051_v16  ;;  %v1019_v43 = vpop.f32.mrb[41].mxu1 }
 0x279   : > { %v3111_v44 = vadd.f32 %v1019_v43, %v3053_v3  ;;  %v2239_v45 = vpop.f32.mrb[42].mxu1 }
 0x27a   : > { %v1022_v46 = vpop.f32.mrb[43].mxu1  ;;  %v1211_v47 = vsel %vm1180_vm0, %v3108_v41, -inf  ;;  %v3116_v48 = vadd.f32 %v2239_v45, %v3055_v30 }
 0x27b   : > { %1212 = vmax.xlane.f32.xlu0 %v1211_v47  ;;  %v1205_v49 = vsel %vm1180_vm0, %v3111_v44, -inf  ;;  %v3121_v50 = vadd.f32 %v1022_v46, %v3068_v10 }
 0x27c   : > { %1206 = vmax.xlane.f32.xlu1 %v1205_v49  ;;  %v1214_v53 = vsel %vm1180_vm0, %v3116_v48, -inf }
 0x27d   : > { %v1208_v60 = vsel %vm1180_vm0, %v3121_v50, -inf }
 0x27f   : > { %v2242_v51 = vpop.f32.mrb[44].mxu1 }
 0x280   : > { %v3126_v55 = vadd.f32 %v2242_v51, %v3077_v15  ;;  %1215 = vmax.xlane.f32.xlu1 %v1214_v53  ;;  %v1035_v6 = vpop.f32.mrb[45].mxu1 }
 0x281   : > { %v2243_v56 = vpop.f32.mrb[46].mxu1  ;;  %v3129_v57 = vadd.f32 %v1035_v6, %v3091_v31 }
 0x282   : > { %v1038_v58 = vpop.f32.mrb[47].mxu1  ;;  %v1223_v59 = vsel %vm1180_vm0, %v3126_v55, -inf  ;;  %v3134_v4 = vadd.f32 %v2243_v56, %v3079_v20 }
 0x283   : > { %1224 = vmax.xlane.f32.xlu0 %v1223_v59  ;;  %v1217_v61 = vsel %vm1180_vm0, %v3129_v57, -inf  ;;  %v3141_v62 = vadd.f32 %v1038_v58, %v3081_v23 }
 0x284   : > { %1209 = vmax.xlane.f32.xlu1 %v1208_v60  ;;  %v1226_v63 = vsel %vm1180_vm0, %v3134_v4, -inf }
 0x285   : > { %v1220_v18 = vsel %vm1180_vm0, %v3141_v62, -inf }
 0x287   : > { %1218 = vmax.xlane.f32.xlu0 %v1217_v61 }
 0x288   : > { %1227 = vmax.xlane.f32.xlu1 %v1226_v63 }
 0x28c   : > { %1221 = vmax.xlane.f32.xlu1 %v1220_v18 }
 0x297   : > { %v2254_v1 = vpop.f32.mrb[64].mxu0 }
 0x298   : > { %v3148_v5 = vadd.f32 %v2254_v1, %v3051_v16  ;;  %v1084_v7 = vpop.f32.mrb[65].mxu0 }
 0x299   : > { %v2255_v8 = vpop.f32.mrb[66].mxu0  ;;  %v3151_v9 = vadd.f32 %v1084_v7, %v3053_v3 }
 0x29a   : > { %v3154_v11 = vadd.f32 %v2255_v8, %v3055_v30  ;;  %v1087_v13 = vpop.f32.mrb[67].mxu0  ;;  %v1235_v19 = vsel %vm1180_vm0, %v3148_v5, -inf }
 0x29b   : > { %1236 = vmax.xlane.f32.xlu0 %v1235_v19  ;;  %v3159_v21 = vadd.f32 %v1087_v13, %v3068_v10  ;;  %v1229_v26 = vsel %vm1180_vm0, %v3151_v9, -inf }
 0x29c   : > { %v1238_v22 = vsel %vm1180_vm0, %v3154_v11, -inf }
 0x29d   : > { %1239 = vmax.xlane.f32.xlu1 %v1238_v22  ;;  %v1232_v36 = vsel %vm1180_vm0, %v3159_v21, -inf }
 0x29f   : > { %v2258_v27 = vpop.f32.mrb[68].mxu0  ;;  %1230 = vmax.xlane.f32.xlu0 %v1229_v26 }
 0x2a0   : > { %v1100_v34 = vpop.f32.mrb[69].mxu0  ;;  %v3194_v61 = vadd.f32 %v2258_v27, %v3077_v15 }
 0x2a1   : > { %v3168_v37 = vadd.f32 %v1100_v34, %v3091_v31  ;;  %v2259_v38 = vpop.f32.mrb[70].mxu0  ;;  %1233 = vmax.xlane.f32.xlu1 %v1232_v36 }
 0x2a2   : > { %v1103_v39 = vpop.f32.mrb[71].mxu0  ;;  %v3199_v63 = vadd.f32 %v2259_v38, %v3079_v20  ;;  %v1247_v7 = vsel %vm1180_vm0, %v3194_v61, -inf }
 0x2a3   : > { %v3171_v43 = vadd.f32 %v1103_v39, %v3081_v23  ;;  %v1241_v45 = vsel %vm1180_vm0, %v3168_v37, -inf }
 0x2a4   : > { %1242 = vmax.xlane.f32.xlu0 %v1241_v45  ;;  %v1250_v19 = vsel %vm1180_vm0, %v3199_v63, -inf }
 0x2a5   : > { %v1244_v46 = vsel %vm1180_vm0, %v3171_v43, -inf }
 0x2a6   : > { %1245 = vmax.xlane.f32.xlu1 %v1244_v46 }
 0x2b7   : > { %v2270_v47 = vpop.f32.mrb[48].mxu1 }
 0x2b8   : > { %v3178_v49 = vadd.f32 %v2270_v47, %v3051_v16  ;;  %v1149_v51 = vpop.f32.mrb[49].mxu1 }
 0x2b9   : > { %v2271_v53 = vpop.f32.mrb[50].mxu1  ;;  %v3181_v6 = vadd.f32 %v1149_v51, %v3053_v3 }
 0x2ba   : > { %v3184_v56 = vadd.f32 %v2271_v53, %v3055_v30  ;;  %v1259_v58 = vsel %vm1180_vm0, %v3178_v49, -inf  ;;  %v1152_v59 = vpop.f32.mrb[51].mxu1 }
 0x2bb   : > { %1260 = vmax.xlane.f32.xlu0 %v1259_v58  ;;  %v3189_v60 = vadd.f32 %v1152_v59, %v3068_v10  ;;  %v1253_v3 = vsel %vm1180_vm0, %v3181_v6, -inf }
 0x2bc   : > { %v1262_v16 = vsel %vm1180_vm0, %v3184_v56, -inf }
 0x2bd   : > { %1263 = vmax.xlane.f32.xlu1 %v1262_v16  ;;  %v1256_v18 = vsel %vm1180_vm0, %v3189_v60, -inf }
 0x2bf   : > { %1254 = vmax.xlane.f32.xlu0 %v1253_v3  ;;  %v2274_v30 = vpop.f32.mrb[52].mxu1 }
 0x2c0   : > { %v1165_v10 = vpop.f32.mrb[53].mxu1  ;;  %v3214_v26 = vadd.f32 %v2274_v30, %v3077_v15 }
 0x2c1   : > { %1257 = vmax.xlane.f32.xlu1 %v1256_v18  ;;  %v2275_v1 = vpop.f32.mrb[54].mxu1  ;;  %v3206_v8 = vadd.f32 %v1165_v10, %v3091_v31 }
 0x2c2   : > { %v1168_v13 = vpop.f32.mrb[55].mxu1  ;;  %v3219_v34 = vadd.f32 %v2275_v1, %v3079_v20  ;;  %v1271_v36 = vsel %vm1180_vm0, %v3214_v26, -inf }
 0x2c3   : > { %1248 = vmax.xlane.f32.xlu0 %v1247_v7  ;;  %v3211_v22 = vadd.f32 %v1168_v13, %v3081_v23  ;;  %v1265_v27 = vsel %vm1180_vm0, %v3206_v8, -inf }
 0x2c4   : > { %v1274_v23 = vsel %vm1180_vm0, %v3219_v34, -inf }
 0x2c5   : > { %1251 = vmax.xlane.f32.xlu1 %v1250_v19  ;;  %v1268_v31 = vsel %vm1180_vm0, %v3211_v22, -inf }
 0x2c7   : > { %1266 = vmax.xlane.f32.xlu0 %v1265_v27 }
 0x2c9   : > { %1269 = vmax.xlane.f32.xlu1 %v1268_v31 }
 0x2cb   : > { %1272 = vmax.xlane.f32.xlu0 %v1271_v36 }
 0x2cd   : > { %1275 = vmax.xlane.f32.xlu1 %v1274_v23 }
 0x2e8   : > { %v1189_v15 = vpop.xlane.xlu0 %1188 }
 0x2e9   : > { %v1279_v38 = vsub.f32 %v3058_v28, %v1189_v15 }
 0x2ea   : > { %v1192_v39 = vpop.xlane.xlu1 %1191 }
 0x2eb   : > { %v1313_v45 = vmul.f32 1.442695, %v1279_v38  ;;  %v1280_v20 = vsub.f32 %v3064_v40, %v1192_v39 }
 0x2ec   : > { %v1183_v46 = vpop.xlane.xlu0 %1182 }
 0x2ed   : > { %2464 = vpow2.f32 %v1313_v45  ;;  %v1315_v47 = vmul.f32 1.442695, %v1280_v20  ;;  %v1277_v51 = vsub.f32 %v3061_v42, %v1183_v46 }
 0x2ef   : > { %2466 = vpow2.f32 %v1315_v47  ;;  %v1309_v53 = vmul.f32 1.442695, %v1277_v51 }
 0x2f0   : > { %v1186_v58 = vpop.xlane.xlu0 %1185 }
 0x2f1   : > { %2468 = vpow2.f32 %v1309_v53  ;;  %v1278_v59 = vsub.f32 %v3073_v12, %v1186_v58 }
 0x2f2   : > { %v1204_v16 = vpop.xlane.xlu1 %1203 }
 0x2f3   : > { %v1311_v3 = vmul.f32 1.442695, %v1278_v59  ;;  %v1284_v30 = vsub.f32 %v3087_v25, %v1204_v16 }
 0x2f4   : > { %v1201_v28 = vpop.xlane.xlu0 %1200 }
 0x2f5   : > { %2470 = vpow2.f32 %v1311_v3  ;;  %v1323_v18 = vmul.f32 1.442695, %v1284_v30  ;;  %v1283_v40 = vsub.f32 %v3084_v24, %v1201_v28 }
 0x2f6   : > { %v1198_v10 = vpop.xlane.xlu1 %1197 }
 0x2f7   : > { %v3233_v1 = vpop.eup %2464  ;;  %2472 = vpow2.f32 %v1323_v18  ;;  %v1321_v42 = vmul.f32 1.442695, %v1283_v40  ;;  %v1282_v7 = vsub.f32 %v3094_v33, %v1198_v10 }
 0x2f8   : > { %v1195_v13 = vpop.xlane.xlu0 %1194  ;;  %v1379_v12 = vsel %vm1180_vm0, %v3233_v1, 0.0 }
 0x2f9   : > { %v3238_v19 = vpop.eup %2466  ;;  %2474 = vpow2.f32 %v1321_v42  ;;  %v1319_v25 = vmul.f32 1.442695, %v1282_v7  ;;  %v1281_v27 = vsub.f32 %v3099_v35, %v1195_v13  ;;  %1380 = vadd.xlane.f32.xlu0 %v1379_v12 }
 0x2fa   : > { %v1382_v24 = vsel %vm1180_vm0, %v3238_v19, 0.0 }
 0x2fb   : > { %v3243_v31 = vpop.eup %2468  ;;  %2476 = vpow2.f32 %v1319_v25  ;;  %v1317_v36 = vmul.f32 1.442695, %v1281_v27  ;;  %1383 = vadd.xlane.f32.xlu1 %v1382_v24 }
 0x2fc   : > { %v1373_v33 = vsel %vm1180_vm0, %v3243_v31, 0.0 }
 0x2fd   : > { %2478 = vpow2.f32 %v1317_v36  ;;  %1374 = vadd.xlane.f32.xlu0 %v1373_v33 }
 0x2ff   : > { %v3247_v23 = vpop.eup %2470 }
 0x300   : > { %v1376_v15 = vsel %vm1180_vm0, %v3247_v23, 0.0 }
 0x301   : > { %v3251_v35 = vpop.eup %2472  ;;  %1377 = vadd.xlane.f32.xlu1 %v1376_v15 }
 0x302   : > { %v1394_v39 = vsel %vm1180_vm0, %v3251_v35, 0.0 }
 0x303   : > { %v3253_v38 = vpop.eup %2474 }
 0x304   : > { %v1391_v45 = vsel %vm1180_vm0, %v3253_v38, 0.0 }
 0x305   : > { %v3259_v20 = vpop.eup %2476  ;;  %1395 = vadd.xlane.f32.xlu1 %v1394_v39  ;;  %1392 = vadd.xlane.f32.xlu0 %v1391_v45 }
 0x306   : > { %v1388_v51 = vsel %vm1180_vm0, %v3259_v20, 0.0 }
 0x307   : > { %v3261_v46 = vpop.eup %2478 }
 0x308   : > { %v1213_v47 = vpop.xlane.xlu0 %1212  ;;  %v1385_v53 = vsel %vm1180_vm0, %v3261_v46, 0.0 }
 0x309   : > { %v1287_v58 = vsub.f32 %v3108_v41, %v1213_v47  ;;  %v1207_v59 = vpop.xlane.xlu1 %1206  ;;  %1389 = vadd.xlane.f32.xlu1 %v1388_v51  ;;  %1386 = vadd.xlane.f32.xlu0 %v1385_v53 }
 0x30a   : > { %v1285_v16 = vsub.f32 %v3111_v44, %v1207_v59 }
 0x30b   : > { %v1329_v3 = vmul.f32 1.442695, %v1287_v58 }
 0x30c   : > { %v1325_v30 = vmul.f32 1.442695, %v1285_v16 }
 0x30d   : > { %2480 = vpow2.f32 %v1329_v3  ;;  %v1216_v28 = vpop.xlane.xlu1 %1215 }
 0x30e   : > { %v1288_v18 = vsub.f32 %v3116_v48, %v1216_v28  ;;  %2482 = vpow2.f32 %v1325_v30 }
 0x310   : > { %v1331_v40 = vmul.f32 1.442695, %v1288_v18  ;;  %v1225_v10 = vpop.xlane.xlu0 %1224 }
 0x311   : > { %v1291_v42 = vsub.f32 %v3126_v55, %v1225_v10  ;;  %v1210_v7 = vpop.xlane.xlu1 %1209 }
 0x312   : > { %2484 = vpow2.f32 %v1331_v40  ;;  %v1286_v41 = vsub.f32 %v3121_v50, %v1210_v7 }
 0x313   : > { %v1337_v13 = vmul.f32 1.442695, %v1291_v42 }
 0x314   : > { %v1327_v12 = vmul.f32 1.442695, %v1286_v41  ;;  %v1219_v25 = vpop.xlane.xlu0 %1218 }
 0x315   : > { %2486 = vpow2.f32 %v1337_v13  ;;  %v1289_v44 = vsub.f32 %v3129_v57, %v1219_v25  ;;  %v1228_v27 = vpop.xlane.xlu1 %1227 }
 0x316   : > { %2488 = vpow2.f32 %v1327_v12  ;;  %v1292_v24 = vsub.f32 %v3134_v4, %v1228_v27 }
 0x317   : > { %v3274_v48 = vpop.eup %2480  ;;  %v1333_v36 = vmul.f32 1.442695, %v1289_v44 }
 0x318   : > { %v1339_v33 = vmul.f32 1.442695, %v1292_v24  ;;  %v1403_v55 = vsel %vm1180_vm0, %v3274_v48, 0.0  ;;  %v3278_v15 = vpop.eup %2482 }
 0x319   : > { %2490 = vpow2.f32 %v1333_v36  ;;  %v1222_v50 = vpop.xlane.xlu1 %1221  ;;  %1404 = vadd.xlane.f32.xlu0 %v1403_v55  ;;  %v1397_v4 = vsel %vm1180_vm0, %v3278_v15, 0.0 }
 0x31a   : > { %2492 = vpow2.f32 %v1339_v33  ;;  %v1290_v39 = vsub.f32 %v3141_v62, %v1222_v50 }
 0x31c   : > { %v3281_v57 = vpop.eup %2484  ;;  %v1335_v45 = vmul.f32 1.442695, %v1290_v39 }
 0x31d   : > { %1398 = vadd.xlane.f32.xlu0 %v1397_v4  ;;  %v1406_v47 = vsel %vm1180_vm0, %v3281_v57, 0.0 }
 0x31e   : > { %2494 = vpow2.f32 %v1335_v45  ;;  %1407 = vadd.xlane.f32.xlu1 %v1406_v47 }
 0x31f   : > { %v3287_v51 = vpop.eup %2486 }
 0x320   : > { %v3289_v53 = vpop.eup %2488  ;;  %v1415_v58 = vsel %vm1180_vm0, %v3287_v51, 0.0 }
 0x321   : > { %1416 = vadd.xlane.f32.xlu0 %v1415_v58  ;;  %v1400_v62 = vsel %vm1180_vm0, %v3289_v53, 0.0 }
 0x322   : > { %1401 = vadd.xlane.f32.xlu1 %v1400_v62 }
 0x323   : > { %v3295_v59 = vpop.eup %2490 }
 0x324   : > { %v3297_v16 = vpop.eup %2492  ;;  %v1409_v3 = vsel %vm1180_vm0, %v3295_v59, 0.0 }
 0x325   : > { %1410 = vadd.xlane.f32.xlu0 %v1409_v3  ;;  %v1418_v30 = vsel %vm1180_vm0, %v3297_v16, 0.0 }
 0x326   : > { %1419 = vadd.xlane.f32.xlu1 %v1418_v30 }
 0x328   : > { %v3303_v28 = vpop.eup %2494  ;;  %v1237_v18 = vpop.xlane.xlu0 %1236 }
 0x329   : > { %v1295_v40 = vsub.f32 %v3148_v5, %v1237_v18  ;;  %v1412_v10 = vsel %vm1180_vm0, %v3303_v28, 0.0 }
 0x32a   : > { %v1240_v42 = vpop.xlane.xlu1 %1239  ;;  %1413 = vadd.xlane.f32.xlu1 %v1412_v10 }
 0x32b   : > { %v1345_v7 = vmul.f32 1.442695, %v1295_v40  ;;  %v1296_v41 = vsub.f32 %v3154_v11, %v1240_v42 }
 0x32c   : > { %v1231_v13 = vpop.xlane.xlu0 %1230 }
 0x32d   : > { %2496 = vpow2.f32 %v1345_v7  ;;  %v1347_v12 = vmul.f32 1.442695, %v1296_v41  ;;  %v1293_v25 = vsub.f32 %v3151_v9, %v1231_v13 }
 0x32e   : > { %v1234_v44 = vpop.xlane.xlu1 %1233 }
 0x32f   : > { %2498 = vpow2.f32 %v1347_v12  ;;  %v1341_v27 = vmul.f32 1.442695, %v1293_v25  ;;  %v1294_v24 = vsub.f32 %v3159_v21, %v1234_v44 }
 0x331   : > { %2500 = vpow2.f32 %v1341_v27  ;;  %v1343_v5 = vmul.f32 1.442695, %v1294_v24  ;;  %v1243_v36 = vpop.xlane.xlu0 %1242 }
 0x332   : > { %v1297_v33 = vsub.f32 %v3168_v37, %v1243_v36 }
 0x333   : > { %2502 = vpow2.f32 %v1343_v5  ;;  %v1246_v55 = vpop.xlane.xlu1 %1245 }
 0x334   : > { %v1349_v50 = vmul.f32 1.442695, %v1297_v33  ;;  %v1298_v11 = vsub.f32 %v3171_v43, %v1246_v55 }
 0x336   : > { %2504 = vpow2.f32 %v1349_v50  ;;  %v1351_v39 = vmul.f32 1.442695, %v1298_v11 }
 0x337   : > { %v3313_v45 = vpop.eup %2496 }
 0x338   : > { %2506 = vpow2.f32 %v1351_v39  ;;  %v1427_v9 = vsel %vm1180_vm0, %v3313_v45, 0.0 }
 0x339   : > { %v3317_v4 = vpop.eup %2498  ;;  %1428 = vadd.xlane.f32.xlu0 %v1427_v9 }
 0x33a   : > { %v1430_v21 = vsel %vm1180_vm0, %v3317_v4, 0.0 }
 0x33b   : > { %v3321_v37 = vpop.eup %2500  ;;  %1431 = vadd.xlane.f32.xlu1 %v1430_v21 }
 0x33c   : > { %v1421_v43 = vsel %vm1180_vm0, %v3321_v37, 0.0 }
 0x33d   : > { %v3325_v47 = vpop.eup %2502  ;;  %1422 = vadd.xlane.f32.xlu0 %v1421_v43 }
 0x33e   : > { %v1424_v58 = vsel %vm1180_vm0, %v3325_v47, 0.0 }
 0x33f   : > { %1425 = vadd.xlane.f32.xlu1 %v1424_v58 }
 0x340   : > { %v3329_v62 = vpop.eup %2504 }
 0x341   : > { %v1433_v3 = vsel %vm1180_vm0, %v3329_v62, 0.0 }
 0x342   : > { %v3333_v30 = vpop.eup %2506  ;;  %1434 = vadd.xlane.f32.xlu0 %v1433_v3 }
 0x343   : > { %v1436_v18 = vsel %vm1180_vm0, %v3333_v30, 0.0 }
 0x344   : > { %1437 = vadd.xlane.f32.xlu1 %v1436_v18 }
 0x348   : > { %v1261_v40 = vpop.xlane.xlu0 %1260 }
 0x349   : > { %v1303_v10 = vsub.f32 %v3178_v49, %v1261_v40 }
 0x34a   : > { %v1264_v42 = vpop.xlane.xlu1 %1263 }
 0x34b   : > { %v1361_v7 = vmul.f32 1.442695, %v1303_v10  ;;  %v1304_v41 = vsub.f32 %v3184_v56, %v1264_v42 }
 0x34c   : > { %v1255_v13 = vpop.xlane.xlu0 %1254 }
 0x34d   : > { %2508 = vpow2.f32 %v1361_v7  ;;  %v1363_v12 = vmul.f32 1.442695, %v1304_v41  ;;  %v1301_v25 = vsub.f32 %v3181_v6, %v1255_v13 }
 0x34e   : > { %v1258_v44 = vpop.xlane.xlu1 %1257 }
 0x34f   : > { %2510 = vpow2.f32 %v1363_v12  ;;  %v1357_v27 = vmul.f32 1.442695, %v1301_v25  ;;  %v1302_v24 = vsub.f32 %v3189_v60, %v1258_v44 }
 0x350   : > { %v1249_v5 = vpop.xlane.xlu0 %1248 }
 0x351   : > { %2512 = vpow2.f32 %v1357_v27  ;;  %v1359_v36 = vmul.f32 1.442695, %v1302_v24  ;;  %v1299_v33 = vsub.f32 %v3194_v61, %v1249_v5 }
 0x352   : > { %v1252_v49 = vpop.xlane.xlu1 %1251 }
 0x353   : > { %2514 = vpow2.f32 %v1359_v36  ;;  %v1353_v55 = vmul.f32 1.442695, %v1299_v33  ;;  %v1300_v56 = vsub.f32 %v3199_v63, %v1252_v49 }
 0x354   : > { %v1267_v50 = vpop.xlane.xlu0 %1266 }
 0x355   : > { %2516 = vpow2.f32 %v1353_v55  ;;  %v1355_v11 = vmul.f32 1.442695, %v1300_v56  ;;  %v1305_v6 = vsub.f32 %v3206_v8, %v1267_v50 }
 0x356   : > { %v1270_v39 = vpop.xlane.xlu1 %1269 }
 0x357   : > { %v3344_v9 = vpop.eup %2508  ;;  %2518 = vpow2.f32 %v1355_v11  ;;  %v1365_v60 = vmul.f32 1.442695, %v1305_v6  ;;  %v1306_v21 = vsub.f32 %v3211_v22, %v1270_v39 }
 0x358   : > { %v1273_v43 = vpop.xlane.xlu0 %1272  ;;  %v1451_v61 = vsel %vm1180_vm0, %v3344_v9, 0.0 }
 0x359   : > { %v3349_v58 = vpop.eup %2510  ;;  %2520 = vpow2.f32 %v1365_v60  ;;  %v1367_v63 = vmul.f32 1.442695, %v1306_v21  ;;  %v1307_v3 = vsub.f32 %v3214_v26, %v1273_v43  ;;  %1452 = vadd.xlane.f32.xlu0 %v1451_v61 }
 0x35a   : > { %v1276_v18 = vpop.xlane.xlu1 %1275  ;;  %v1454_v8 = vsel %vm1180_vm0, %v3349_v58, 0.0 }
 0x35b   : > { %v3354_v40 = vpop.eup %2512  ;;  %2522 = vpow2.f32 %v1367_v63  ;;  %v1369_v10 = vmul.f32 1.442695, %v1307_v3  ;;  %v1308_v22 = vsub.f32 %v3219_v34, %v1276_v18  ;;  %1455 = vadd.xlane.f32.xlu1 %v1454_v8 }
 0x35c   : > { %v1445_v42 = vsel %vm1180_vm0, %v3354_v40, 0.0 }
 0x35d   : > { %v3359_v7 = vpop.eup %2514  ;;  %2524 = vpow2.f32 %v1369_v10  ;;  %v1371_v41 = vmul.f32 1.442695, %v1308_v22  ;;  %1446 = vadd.xlane.f32.xlu0 %v1445_v42 }
 0x35e   : > { %v1448_v26 = vsel %vm1180_vm0, %v3359_v7, 0.0 }
 0x35f   : > { %v3363_v13 = vpop.eup %2516  ;;  %2526 = vpow2.f32 %v1371_v41  ;;  %1449 = vadd.xlane.f32.xlu1 %v1448_v26 }
 0x360   : > { %v1439_v12 = vsel %vm1180_vm0, %v3363_v13, 0.0 }
 0x361   : > { %v3367_v34 = vpop.eup %2518  ;;  %1440 = vadd.xlane.f32.xlu0 %v1439_v12 }
 0x362   : > { %v1442_v25 = vsel %vm1180_vm0, %v3367_v34, 0.0 }
 0x363   : > { %v3371_v44 = vpop.eup %2520  ;;  %1443 = vadd.xlane.f32.xlu1 %v1442_v25 }
 0x364   : > { %v1457_v27 = vsel %vm1180_vm0, %v3371_v44, 0.0 }
 0x365   : > { %v3375_v24 = vpop.eup %2522  ;;  %1458 = vadd.xlane.f32.xlu0 %v1457_v27 }
 0x366   : > { %v1460_v5 = vsel %vm1180_vm0, %v3375_v24, 0.0 }
 0x367   : > { %v3379_v36 = vpop.eup %2524  ;;  %1461 = vadd.xlane.f32.xlu1 %v1460_v5 }
 0x368   : > { %v1463_v33 = vsel %vm1180_vm0, %v3379_v36, 0.0 }
 0x369   : > { %v3383_v49 = vpop.eup %2526  ;;  %1464 = vadd.xlane.f32.xlu0 %v1463_v33 }
 0x36a   : > { %v1466_v55 = vsel %vm1180_vm0, %v3383_v49, 0.0 }
 0x36b   : > { %1467 = vadd.xlane.f32.xlu1 %v1466_v55 }
 0x386   : > { %v1381_v56 = vpop.xlane.xlu0 %1380 }
 0x388   : > { %v1384_v50 = vpop.xlane.xlu1 %1383 }
 0x389   : > { %2528 = vrcp.f32 %v1384_v50 }
 0x38a   : > { %v1375_v11 = vpop.xlane.xlu0 %1374 }
 0x38b   : > { %2530 = vrcp.f32 %v1375_v11 }
 0x38c   : > { %2532 = vrcp.f32 %v1381_v56 }
 0x38e   : > { %v1378_v6 = vpop.xlane.xlu1 %1377 }
 0x38f   : > { %2534 = vrcp.f32 %v1378_v6 }
 0x392   : > { %v1396_v39 = vpop.xlane.xlu1 %1395  ;;  %v1393_v60 = vpop.xlane.xlu0 %1392 }
 0x393   : > { %2536 = vrcp.f32 %v1396_v39  ;;  %v2529_v21 = vpop.eup %2528 }
 0x394   : > { %2538 = vrcp.f32 %v1393_v60  ;;  %v1504_v8 = vmul.f32 %v2529_v21, %v3238_v19 }
 0x395   : > { %v2531_v63 = vpop.eup %2530 }
 0x396   : > { %v1390_v43 = vpop.xlane.xlu1 %1389  ;;  %v1387_v61 = vpop.xlane.xlu0 %1386  ;;  %v1501_v10 = vmul.f32 %v2531_v63, %v3243_v31 }
 0x397   : > { %2540 = vrcp.f32 %v1390_v43  ;;  %v2533_v3 = vpop.eup %2532 }
 0x398   : > { %2542 = vrcp.f32 %v1387_v61  ;;  %v1503_v42 = vmul.f32 %v2533_v3, %v3233_v1 }
 0x399   : > { %v2535_v18 = vpop.eup %2534 }
 0x39a   : > { %v1502_v22 = vmul.f32 %v2535_v18, %v3247_v23  ;;  %v1534_v26 = vpack.c.bf16 %v1504_v8, %v1503_v42 }
 0x39c   : > { %v1533_v41 = vpack.c.bf16 %v1502_v22, %v1501_v10 }
 0x39d   : > { %v2537_v12 = vpop.eup %2536 }
 0x39e   : > { %2284 = vmatprep.mubr.msk.bf16.mxu0 %vm1180_vm0, %v1533_v41  ;;  %v2539_v25 = vpop.eup %2538  ;;  %v1508_v1 = vmul.f32 %v2537_v12, %v3251_v35 }
 0x39f   : > { %2285 = vmatmul.mubr.msk.bf16.vlgmr.msra.gmra.mrb[72].mxu0 %vm1180_vm0, %v1534_v26  ;;  %v1507_v23 = vmul.f32 %v2539_v25, %v3253_v38 }
 0x3a0   : > { %2309 = vmatpush3.bf16.msra.mxu0 %v3019_v54 }
 0x3a1   : > { %v2541_v27 = vpop.eup %2540  ;;  %2310 = vmatprep.subr.bf16.mxu0 %v3017_v52  ;;  %v1536_v56 = vpack.c.bf16 %v1508_v1, %v1507_v23 }
 0x3a2   : > { %v2543_v19 = vpop.eup %2542  ;;  %v1506_v31 = vmul.f32 %v2541_v27, %v3259_v20 }
 0x3a3   : > { %v1505_v5 = vmul.f32 %v2543_v19, %v3261_v46 }
 0x3a4   : > { %2311 = vmatpush3.bf16.msra.mxu0 %v3017_v52 }
 0x3a5   : > { %2312 = vmatprep.subr.bf16.mxu0 %v3023_v2  ;;  %v1535_v33 = vpack.c.bf16 %v1506_v31, %v1505_v5 }
 0x3a6   : > { %v1405_v55 = vpop.xlane.xlu0 %1404 }
 0x3a7   : > { %2288 = vmatprep.mubr.msk.bf16.mxu0 %vm1180_vm0, %v1535_v33 }
 0x3a8   : > { %2289 = vmatmul.mubr.msk.bf16.gmra.mrb[76].mxu0 %vm1180_vm0, %v1536_v56 }
 0x3a9   : > { %2313 = vmatpush3.bf16.msra.mxu0 %v3023_v2 }
 0x3aa   : > { %2314 = vmatprep.subr.bf16.mxu0 %v3021_v0  ;;  %v1399_v54 = vpop.xlane.xlu0 %1398 }
 0x3ab   : > { %v1408_v38 = vpop.xlane.xlu1 %1407 }
 0x3ac   : > { %2544 = vrcp.f32 %v1408_v38 }
 0x3ad   : > { %2315 = vmatpush3.bf16.msra.mxu0 %v3021_v0  ;;  %2546 = vrcp.f32 %v1399_v54 }
 0x3ae   : > { %v1417_v52 = vpop.xlane.xlu0 %1416  ;;  %2548 = vrcp.f32 %v1405_v55 }
 0x3af   : > { %v1402_v35 = vpop.xlane.xlu1 %1401 }
 0x3b0   : > { %2550 = vrcp.f32 %v1402_v35 }
 0x3b2   : > { %v1411_v20 = vpop.xlane.xlu0 %1410 }
 0x3b3   : > { %v1420_v46 = vpop.xlane.xlu1 %1419 }
 0x3b4   : > { %2552 = vrcp.f32 %v1420_v46 }
 0x3b5   : > { %2554 = vrcp.f32 %v1411_v20 }
 0x3b6   : > { %v2545_v50 = vpop.eup %2544  ;;  %2556 = vrcp.f32 %v1417_v52 }
 0x3b7   : > { %v1414_v11 = vpop.xlane.xlu1 %1413  ;;  %v2547_v2 = vpop.eup %2546  ;;  %v1512_v60 = vmul.f32 %v2545_v50, %v3281_v57 }
 0x3b8   : > { %2558 = vrcp.f32 %v1414_v11  ;;  %v2549_v6 = vpop.eup %2548  ;;  %v1509_v0 = vmul.f32 %v2547_v2, %v3278_v15 }
 0x3b9   : > { %v1511_v43 = vmul.f32 %v2549_v6, %v3274_v48 }
 0x3ba   : > { %v2551_v39 = vpop.eup %2550 }
 0x3bb   : > { %v1510_v21 = vmul.f32 %v2551_v39, %v3289_v53  ;;  %v1538_v63 = vpack.c.bf16 %v1512_v60, %v1511_v43 }
 0x3bd   : > { %v1537_v61 = vpack.c.bf16 %v1510_v21, %v1509_v0 }
 0x3be   : > { %v2553_v3 = vpop.eup %2552 }
 0x3bf   : > { %2300 = vmatprep.mubr.msk.bf16.mxu1 %vm1180_vm0, %v1537_v61  ;;  %v2555_v18 = vpop.eup %2554  ;;  %v1516_v15 = vmul.f32 %v2553_v3, %v3297_v16 }
 0x3c0   : > { %2301 = vmatmul.mubr.msk.bf16.vlgmr.msra.gmra.mrb[56].mxu1 %vm1180_vm0, %v1538_v63  ;;  %v2557_v8 = vpop.eup %2556  ;;  %v1513_v57 = vmul.f32 %v2555_v18, %v3295_v59 }
 0x3c1   : > { %2325 = vmatpush3.bf16.msra.mxu1 %v3027_v17  ;;  %v1515_v53 = vmul.f32 %v2557_v8, %v3287_v51 }
 0x3c2   : > { %v2559_v10 = vpop.eup %2558  ;;  %2326 = vmatprep.subr.bf16.mxu1 %v3025_v14 }
 0x3c3   : > { %v1514_v48 = vmul.f32 %v2559_v10, %v3303_v28  ;;  %v1540_v41 = vpack.c.bf16 %v1516_v15, %v1515_v53 }
 0x3c5   : > { %2327 = vmatpush3.bf16.msra.mxu1 %v3025_v14  ;;  %v1539_v22 = vpack.c.bf16 %v1514_v48, %v1513_v57 }
 0x3c6   : > { %2328 = vmatprep.subr.bf16.mxu1 %v3031_v32  ;;  %v1429_v42 = vpop.xlane.xlu0 %1428 }
 0x3c7   : > { %2304 = vmatprep.mubr.msk.bf16.mxu1 %vm1180_vm0, %v1539_v22 }
 0x3c8   : > { %v1432_v17 = vpop.xlane.xlu1 %1431  ;;  %2305 = vmatmul.mubr.msk.bf16.gmra.mrb[60].mxu1 %vm1180_vm0, %v1540_v41 }
 0x3c9   : > { %2329 = vmatpush3.bf16.msra.mxu1 %v3031_v32  ;;  %2560 = vrcp.f32 %v1432_v17 }
 0x3ca   : > { %2330 = vmatprep.subr.bf16.mxu1 %v3029_v29  ;;  %v1423_v59 = vpop.xlane.xlu0 %1422 }
 0x3cb   : > { %2562 = vrcp.f32 %v1423_v59 }
 0x3cc   : > { %2564 = vrcp.f32 %v1429_v42  ;;  %v1426_v51 = vpop.xlane.xlu1 %1425 }
 0x3cd   : > { %2566 = vrcp.f32 %v1426_v51  ;;  %2331 = vmatpush3.bf16.msra.mxu1 %v3029_v29 }
 0x3cf   : > { %v1435_v14 = vpop.xlane.xlu0 %1434 }
 0x3d0   : > { %2568 = vrcp.f32 %v1435_v14 }
 0x3d1   : > { %v1438_v16 = vpop.xlane.xlu1 %1437 }
 0x3d2   : > { %2570 = vrcp.f32 %v1438_v16 }
 0x3d3   : > { %v2561_v28 = vpop.eup %2560 }
 0x3d4   : > { %v1520_v32 = vmul.f32 %v2561_v28, %v3317_v4 }
 0x3d5   : > { %v2563_v26 = vpop.eup %2562 }
 0x3d6   : > { %v2565_v12 = vpop.eup %2564  ;;  %v1517_v27 = vmul.f32 %v2563_v26, %v3321_v37 }
 0x3d7   : > { %v2567_v25 = vpop.eup %2566  ;;  %v1519_v31 = vmul.f32 %v2565_v12, %v3313_v45 }
 0x3d8   : > { %v1518_v19 = vmul.f32 %v2567_v25, %v3325_v47 }
 0x3d9   : > { %v1542_v5 = vpack.c.bf16 %v1520_v32, %v1519_v31 }
 0x3da   : > { %v2569_v23 = vpop.eup %2568  ;;  %v1541_v1 = vpack.c.bf16 %v1518_v19, %v1517_v27 }
 0x3db   : > { %v1521_v33 = vmul.f32 %v2569_v23, %v3329_v62 }
 0x3dc   : > { %v2571_v29 = vpop.eup %2570  ;;  %2316 = vmatprep.mubr.msk.bf16.mxu0 %vm1180_vm0, %v1541_v1 }
 0x3dd   : > { %2317 = vmatmul.mubr.msk.bf16.vlgmr.msra.gmra.mrb[80].mxu0 %vm1180_vm0, %v1542_v5  ;;  %v1522_v55 = vmul.f32 %v2571_v29, %v3333_v30 }
 0x3df   : > { %v1543_v56 = vpack.c.bf16 %v1522_v55, %v1521_v33 }
 0x3e1   : > { %2320 = vmatprep.mubr.msk.bf16.mxu0 %vm1180_vm0, %v1543_v56 }
 0x3e6   : > { %v1453_v4 = vpop.xlane.xlu0 %1452 }
 0x3e8   : > { %v1456_v37 = vpop.xlane.xlu1 %1455 }
 0x3e9   : > { %2572 = vrcp.f32 %v1456_v37 }
 0x3ea   : > { %v1447_v47 = vpop.xlane.xlu0 %1446 }
 0x3eb   : > { %2574 = vrcp.f32 %v1447_v47 }
 0x3ec   : > { %2576 = vrcp.f32 %v1453_v4  ;;  %v1450_v45 = vpop.xlane.xlu1 %1449 }
 0x3ed   : > { %2578 = vrcp.f32 %v1450_v45 }
 0x3ee   : > { %v1441_v54 = vpop.xlane.xlu0 %1440 }
 0x3ef   : > { %2580 = vrcp.f32 %v1441_v54 }
 0x3f0   : > { %v1444_v38 = vpop.xlane.xlu1 %1443 }
 0x3f1   : > { %2582 = vrcp.f32 %v1444_v38 }
 0x3f2   : > { %v1459_v52 = vpop.xlane.xlu0 %1458 }
 0x3f3   : > { %2584 = vrcp.f32 %v1459_v52  ;;  %v2573_v62 = vpop.eup %2572 }
 0x3f4   : > { %v1462_v35 = vpop.xlane.xlu1 %1461  ;;  %v1528_v11 = vmul.f32 %v2573_v62, %v3349_v58 }
 0x3f5   : > { %v2575_v30 = vpop.eup %2574  ;;  %2586 = vrcp.f32 %v1462_v35 }
 0x3f6   : > { %v2577_v20 = vpop.eup %2576  ;;  %v1465_v46 = vpop.xlane.xlu0 %1464  ;;  %v1525_v6 = vmul.f32 %v2575_v30, %v3354_v40 }
 0x3f7   : > { %v2579_v50 = vpop.eup %2578  ;;  %2588 = vrcp.f32 %v1465_v46  ;;  %v1527_v0 = vmul.f32 %v2577_v20, %v3344_v9 }
 0x3f8   : > { %v1468_v2 = vpop.xlane.xlu1 %1467  ;;  %v1526_v39 = vmul.f32 %v2579_v50, %v3359_v7 }
 0x3f9   : > { %v2581_v60 = vpop.eup %2580  ;;  %2590 = vrcp.f32 %v1468_v2  ;;  %v1546_v61 = vpack.c.bf16 %v1528_v11, %v1527_v0 }
 0x3fa   : > { %v1545_v21 = vpack.c.bf16 %v1526_v39, %v1525_v6  ;;  %v1523_v63 = vmul.f32 %v2581_v60, %v3363_v13 }
 0x3fb   : > { %v2583_v43 = vpop.eup %2582 }
 0x3fc   : > { %2332 = vmatprep.mubr.msk.bf16.mxu1 %vm1180_vm0, %v1545_v21  ;;  %v1524_v3 = vmul.f32 %v2583_v43, %v3367_v34 }
 0x3fd   : > { %v2585_v58 = vpop.eup %2584  ;;  %2333 = vmatmul.mubr.msk.bf16.vlgmr.msra.gmra.mrb[64].mxu1 %vm1180_vm0, %v1546_v61 }
 0x3fe   : > { %v1544_v40 = vpack.c.bf16 %v1524_v3, %v1523_v63  ;;  %v1529_v9 = vmul.f32 %v2585_v58, %v3371_v44 }
 0x3ff   : > { %v2587_v18 = vpop.eup %2586 }
 0x400   : > { %2321 = vmatmul.mubr.msk.bf16.gmra.mrb[84].mxu0 %vm1180_vm0, %v1544_v40  ;;  %v1530_v7 = vmul.f32 %v2587_v18, %v3375_v24 }
 0x401   : > { %v2589_v8 = vpop.eup %2588 }
 0x402   : > { %v1547_v10 = vpack.c.bf16 %v1530_v7, %v1529_v9  ;;  %v1531_v13 = vmul.f32 %v2589_v8, %v3379_v36 }
 0x403   : > { %v2591_v15 = vpop.eup %2590 }
 0x404   : > { %2336 = vmatprep.mubr.msk.bf16.mxu1 %vm1180_vm0, %v1547_v10  ;;  %v1532_v34 = vmul.f32 %v2591_v15, %v3383_v49 }
 0x406   : > { %v1548_v57 = vpack.c.bf16 %v1532_v34, %v1531_v13 }
 0x408   : > { %2337 = vmatmul.mubr.msk.bf16.gmra.mrb[68].mxu1 %vm1180_vm0, %v1548_v57 }
 0x472   : > { %v2286_v48 = vpop.f32.mrb[72].mxu0 }
 0x473   : > { %1859 = vst [vmem:[%s3450_s20 + $0x10] sm:$0xff] %v2286_v48  ;;  %v1595_v44 = vpop.f32.mrb[73].mxu0 }
 0x474   : > { %1857 = vst [vmem:[%s3450_s20] sm:$0xff] %v1595_v44  ;;  %v2287_v24 = vpop.f32.mrb[74].mxu0 }
 0x475   : > { %1860 = vst [vmem:[%s3450_s20 + $0x18] sm:$0xff] %v2287_v24  ;;  %v1598_v36 = vpop.f32.mrb[75].mxu0 }
 0x476   : > { %1858 = vst [vmem:[%s3450_s20 + $0x8] sm:$0xff] %v1598_v36 }
 0x47b   : > { %v2290_v49 = vpop.f32.mrb[76].mxu0 }
 0x47c   : > { %1863 = vst [vmem:[%s3450_s20 + $0x30] sm:$0xff] %v2290_v49  ;;  %v1611_v53 = vpop.f32.mrb[77].mxu0 }
 0x47d   : > { %1861 = vst [vmem:[%s3450_s20 + $0x20] sm:$0xff] %v1611_v53  ;;  %v2291_v22 = vpop.f32.mrb[78].mxu0 }
 0x47e   : > { %1864 = vst [vmem:[%s3450_s20 + $0x38] sm:$0xff] %v2291_v22  ;;  %v1614_v42 = vpop.f32.mrb[79].mxu0 }
 0x47f   : > { %1862 = vst [vmem:[%s3450_s20 + $0x28] sm:$0xff] %v1614_v42 }
 0x493   : > { %v2302_v41 = vpop.f32.mrb[56].mxu1 }
 0x494   : > { %1867 = vst [vmem:[%s3450_s20 + $0x50] sm:$0xff] %v2302_v41  ;;  %v1672_v17 = vpop.f32.mrb[57].mxu1 }
 0x495   : > { %1865 = vst [vmem:[%s3450_s20 + $0x40] sm:$0xff] %v1672_v17  ;;  %v2303_v59 = vpop.f32.mrb[58].mxu1 }
 0x496   : > { %1868 = vst [vmem:[%s3450_s20 + $0x58] sm:$0xff] %v2303_v59  ;;  %v1675_v51 = vpop.f32.mrb[59].mxu1 }
 0x497   : > { %1866 = vst [vmem:[%s3450_s20 + $0x48] sm:$0xff] %v1675_v51 }
 0x49b   : > { %v2306_v14 = vpop.f32.mrb[60].mxu1 }
 0x49c   : > { %1871 = vst [vmem:[%s3450_s20 + $0x70] sm:$0xff] %v2306_v14  ;;  %v1688_v16 = vpop.f32.mrb[61].mxu1 }
 0x49d   : > { %1869 = vst [vmem:[%s3450_s20 + $0x60] sm:$0xff] %v1688_v16  ;;  %v2307_v28 = vpop.f32.mrb[62].mxu1 }
 0x49e   : > { %1872 = vst [vmem:[%s3450_s20 + $0x78] sm:$0xff] %v2307_v28  ;;  %v1691_v26 = vpop.f32.mrb[63].mxu1 }
 0x49f   : > { %1870 = vst [vmem:[%s3450_s20 + $0x68] sm:$0xff] %v1691_v26 }
 0x4b0   : > { %v2318_v12 = vpop.f32.mrb[80].mxu0 }
 0x4b1   : > { %1875 = vst [vmem:[%s3450_s20 + $0x90] sm:$0xff] %v2318_v12  ;;  %v1749_v25 = vpop.f32.mrb[81].mxu0 }
 0x4b2   : > { %1873 = vst [vmem:[%s3450_s20 + $0x80] sm:$0xff] %v1749_v25  ;;  %v2319_v32 = vpop.f32.mrb[82].mxu0 }
 0x4b3   : > { %1876 = vst [vmem:[%s3450_s20 + $0x98] sm:$0xff] %v2319_v32  ;;  %v1752_v27 = vpop.f32.mrb[83].mxu0 }
 0x4b4   : > { %1874 = vst [vmem:[%s3450_s20 + $0x88] sm:$0xff] %v1752_v27 }
 0x4d0   : > { %v2334_v19 = vpop.f32.mrb[64].mxu1 }
 0x4d1   : > { %1883 = vst [vmem:[%s3450_s20 + $0xd0] sm:$0xff] %v2334_v19  ;;  %v1826_v31 = vpop.f32.mrb[65].mxu1 }
 0x4d2   : > { %1881 = vst [vmem:[%s3450_s20 + $0xc0] sm:$0xff] %v1826_v31  ;;  %v2335_v23 = vpop.f32.mrb[66].mxu1 }
 0x4d3   : > { %1884 = vst [vmem:[%s3450_s20 + $0xd8] sm:$0xff] %v2335_v23  ;;  %v2322_v1 = vpop.f32.mrb[84].mxu0  ;;  %v1829_v5 = vpop.f32.mrb[67].mxu1 }
 0x4d4   : > { %1879 = vst [vmem:[%s3450_s20 + $0xb0] sm:$0xff] %v2322_v1  ;;  %1882 = vst [vmem:[%s3450_s20 + $0xc8] sm:$0xff] %v1829_v5  ;;  %v1765_v29 = vpop.f32.mrb[85].mxu0 }
 0x4d5   : > { %1877 = vst [vmem:[%s3450_s20 + $0xa0] sm:$0xff] %v1765_v29  ;;  %v2323_v33 = vpop.f32.mrb[86].mxu0 }
 0x4d6   : > { %1880 = vst [vmem:[%s3450_s20 + $0xb8] sm:$0xff] %v2323_v33  ;;  %v1768_v55 = vpop.f32.mrb[87].mxu0 }
 0x4d7   : > { %1878 = vst [vmem:[%s3450_s20 + $0xa8] sm:$0xff] %v1768_v55 }
 0x4db   : > { %v2338_v56 = vpop.f32.mrb[68].mxu1 }
 0x4dc   : > { %1887 = vst [vmem:[%s3450_s20 + $0xf0] sm:$0xff] %v2338_v56  ;;  %v1842_v4 = vpop.f32.mrb[69].mxu1 }
 0x4dd   : > { %1885 = vst [vmem:[%s3450_s20 + $0xe0] sm:$0xff] %v1842_v4  ;;  %v2339_v37 = vpop.f32.mrb[70].mxu1 }
 0x4de   : > { %1888 = vst [vmem:[%s3450_s20 + $0xf8] sm:$0xff] %v2339_v37  ;;  %v1845_v47 = vpop.f32.mrb[71].mxu1 }
 0x4df   : > { %1886 = vst [vmem:[%s3450_s20 + $0xe8] sm:$0xff] %v1845_v47 }
 0x4e0   : > { %2691 = shalt.err (!%p2688_p2)
}
 0x4e1   : > { %s2692_s17 = scalar_lea.hbm %s3486_s7, 4096  ;;  %s2696_s30 = scalar_lea.hbm %s3538_s3, 8192 }
 0x4e2   : > { %p2693_p13 = scmp.ne.s32.totalorder %s3486_s7, %s2692_s17  ;;  %p2697_p4 = scmp.lt.u32.totalorder %s3486_s7, %s3538_s3 }
 0x4e3   : > { %p2698_p7 = scmp.lt.u32.totalorder %s2696_s30, %s2692_s17  ;;  %p2700_p11 = scmp.lt.u32.totalorder %s2692_s17, %s3486_s7 }
 0x4e4   : > { %p2694_p6 = pnand %p2693_p13, %p3552_p0 }
 0x4e5   : > { %p2699_p8 = por %p2698_p7, %p2697_p4 }
 0x4e6   : > { %p2695_p10 = pneg %p2694_p6 }
 0x4e7   : > { %p2701_p1 = por %p2700_p11, %p2699_p8 }
 0x4e9   : > { %p2702_p3 = pnand %p2701_p1, %p2695_p10 }
 0x4eb   : > { %2705 = shalt.err (!%p2702_p3)
}
 0x4ec   : > { %s2761_s18 = smov 128   ;;  %s2762_s20 = smov 8  }
 0x4ed   : > { %2350 = dma.vmem_to_hbm [thread:$0]  (%p3552_p0), %s3488_s27, 4096, %s3486_s7, %s1890_s16, %s2761_s18, %s2761_s18, %s2762_s20  }
 0x4ee PF: > { %s1919_s24 = sand.u32 1, %s2736_s12   ;;  %p3553_p5 = scmp.ne.s32.totalorder %s3543_s19, 0 }
 0x4ef   : > { %p3554_p9 = scmp.ge.s32.totalorder %s2748_s15, 2  ;;  %s1920_s28 = scalar_lea.sflag [#allocation4], %s1919_s24 }
 0x4f1   : > { %p2364_p12 = pnand %p3554_p9, %p3553_p5 }
 0x4f3   : > { %2731 = dma.done.wait (!%p2364_p12), %s1920_s28, 4096  }
 0x4f4   : > { %2733 = vsyncadd (!%p2364_p12), %s1920_s28, 4294963200  ;;  %p17_p2 = scmp.ge.s32.totalorder %s2893_s6, 4   ;;  %s3555_s12 = smov %s2740_s13 }
 0x4f5   : > { %s3556_s13 = smov %s2744_s14  ;;  %s3557_s14 = smov %s2902_s9 }
 0x4f6   : > { %s3558_s15 = smov %s2893_s6  ;;  %19 = sbr.rel (!%p17_p2) target bundleno = 6 (0x6), region = 85 }
 0x4fd   :  { %1925 = vsyncpa [#allocation3], 1 }
 0x4fe   :  { %1927 = vsyncpa [#allocation3 + $0x1], 1 }
 0x4ff   :  { %1928 = vsyncpa [#allocation6], 1 }
 0x500   :  { %1929 = vsyncpa [#allocation4], 1 }
 0x501   :  { %1931 = vsyncpa [#allocation4 + $0x1], 1 }

</bundles_post_ra>
